<compile_context>
chip_gen: v6e
topology: v6e:2x2x1
jax: 0.10.0
libtpu: 0.0.40
codegen_flags: <defaults>
</compile_context>

<pallas_src>
import jax
import jax.numpy as jnp
from jax.experimental import pallas as pl
from jax.experimental.pallas import tpu as pltpu


# ----------------------------------------------------------------------------
# Fused LSTM + 'general' attention + linear_out kernel (single invocation)
# ----------------------------------------------------------------------------
def _decoder_fused_kernel(emb_ref, mem_ref, mask_ref, h0_ref, c0_ref,
                          wih_ref, whh_ref, bias_ref,
                          wa_ref, wc_ref, wq_ref,
                          dec_ref, attn_ref, hfin_ref, cfin_ref,
                          hseq_ref):
    # emb_ref : (T*B, E)   time-major flattened embeddings, row = t*B + b
    # mem_ref : (B, S, H)  encoder memory bank (batch-major)
    # mask_ref: (B, S)     additive attention mask (0 valid / -1e9 padded)
    # dec_ref : (T, B, H)  decoder outputs in API order
    # attn_ref: (T, B, S)  attention in API order
    # hseq_ref: (B, T, H)  VMEM scratch holding the LSTM hidden sequence
    B, H = h0_ref.shape
    TB = emb_ref.shape[0]
    T = TB // B

    # ---- hoisted input projection: ONE MXU matmul covering all timesteps -----
    gx = (jnp.dot(emb_ref[...], wih_ref[...],
                  preferred_element_type=jnp.float32)
          + bias_ref[...])                                   # (T*B, 4H)

    # ---- recurrence: only h_{t-1} @ W_hh stays on the serial path -------------
    # T is static and small -> fully unrolled; hidden sequence goes straight into
    # the batch-major scratch so nothing needs re-gathering afterwards.
    whh = whh_ref[...]
    h = h0_ref[...]                                          # (B, H)
    c = c0_ref[...]
    for t in range(T):
        gates = gx[t * B:(t + 1) * B, :] + jnp.dot(
            h, whh, preferred_element_type=jnp.float32)      # (B, 4H)
        # Full-vreg activations, then lane slices (PyTorch gate order i, f, g, o).
        sig = jax.nn.sigmoid(gates)                          # (B, 4H) one EUP pass
        th = jnp.tanh(gates)                                 # (B, 4H) one EUP pass
        i_g = sig[:, 0:H]
        f_g = sig[:, H:2 * H]
        g_g = th[:, 2 * H:3 * H]
        o_g = sig[:, 3 * H:4 * H]
        c = f_g * c + i_g * g_g
        h = o_g * jnp.tanh(c)
        hseq_ref[:, t, :] = h                                # batch-major store

    hfin_ref[...] = h                                        # final states once
    cfin_ref[...] = c

    # ---- attention ('general') + linear_out, fully batched --------------------
    hseq = hseq_ref[...]                                     # (B, T, H)
    hs2d = hseq.reshape(B * T, H)                            # per-batch slabs stack

    # linear_in for all positions in one flattened matmul
    qp = jnp.dot(hs2d, wa_ref[...],
                 preferred_element_type=jnp.float32).reshape(B, T, H)

    mem = mem_ref[...]                                       # (B, S, H)
    # scores[b,t,s] = sum_h qp[b,t,h] * mem[b,s,h]  (no materialized transpose)
    scores = jax.lax.dot_general(
        qp, mem, (((2,), (2,)), ((0,), (0,))),
        preferred_element_type=jnp.float32)                  # (B, T, S)
    scores = scores + mask_ref[...][:, None, :]              # length masking

    mx = jnp.max(scores, axis=-1, keepdims=True)
    e = jnp.exp(scores - mx)
    align = e / jnp.sum(e, axis=-1, keepdims=True)           # exact softmax (B,T,S)

    # ctx[b,t,h] = sum_s align[b,t,s] * mem[b,s,h]
    ctx = jax.lax.dot_general(
        align, mem, (((2,), (1,)), ((0,), (0,))),
        preferred_element_type=jnp.float32)                  # (B, T, H)

    # linear_out([ctx ; h]) with bias=False: two flattened (B*T,H)@(H,H) matmuls
    out = jnp.tanh(
        jnp.dot(ctx.reshape(B * T, H), wc_ref[...],
                preferred_element_type=jnp.float32)
        + jnp.dot(hs2d, wq_ref[...],
                  preferred_element_type=jnp.float32)
    ).reshape(B, T, H)

    # ---- emit outputs directly in (T, B, *) API order --------------------------
    # Leading-index stores per timestep: removes the two wrapper XLA transposes
    # that previously cost about as much as the whole fused kernel in launch
    # overhead at these toy sizes.
    for t in range(T):
        dec_ref[t] = out[:, t, :]                            # (B, H)
        attn_ref[t] = align[:, t, :]                         # (B, S)


def decoder_forward(emb_flat, mem_bsh, attn_mask, h0, c0,
                    w_ih, w_hh, bias, w_a, w_out_ctx, w_out_q):
    """All-in-one decoder step.

    emb_flat: (T*B, E) time-major; mem_bsh: (B, S, H); attn_mask: (B, S);
    h0/c0: (B, H); w_ih: (E, 4H); w_hh: (H, 4H); bias: (1, 4H);
    w_a / w_out_ctx / w_out_q: (H, H).
    Returns dec (T, B, H), attn (T, B, S), h_fin (B, H), c_fin (B, H).
    """
    B, S, H = mem_bsh.shape
    T = emb_flat.shape[0] // B
    vmem = pl.BlockSpec(memory_space=pltpu.MemorySpace.VMEM)
    out_shape = (
        jax.ShapeDtypeStruct((T, B, H), jnp.float32),
        jax.ShapeDtypeStruct((T, B, S), jnp.float32),
        jax.ShapeDtypeStruct((B, H), jnp.float32),
        jax.ShapeDtypeStruct((B, H), jnp.float32),
    )
    # Gridless: everything fits comfortably in VMEM at these shapes (f32 kept for
    # parity with the PyTorch reference -- bf16 MXU inputs would drift slightly).
    # TODO(synk): when B/S/T grow, tile S or B via BlockSpec and raise
    # vmem_limit_bytes in pltpu.CompilerParams (v5e scoped default 16 MiB,
    # v7x physical VMEM is only 64 MiB).
    return pl.pallas_call(
        _decoder_fused_kernel,
        out_shape=out_shape,
        in_specs=[vmem] * 11,
        out_specs=(vmem, vmem, vmem, vmem),
        scratch_shapes=[pltpu.VMEM((B, T, H), jnp.float32)],
    )(emb_flat, mem_bsh, attn_mask, h0, c0, w_ih, w_hh, bias,
      w_a, w_out_ctx, w_out_q)


# ----------------------------------------------------------------------------
# RNNDecoderBase equivalent (forward-pass only, deterministic synthetic params)
# ----------------------------------------------------------------------------
class RNNDecoderBasePallas:
    def __init__(self, rnn_type="LSTM", bidirectional_encoder=False,
                 num_layers=1, hidden_size=32, emb_dim=32, vocab_size=50,
                 attn_type="general", dropout=0.0, seed=0):
        assert rnn_type == "LSTM" and num_layers == 1
        self.attentional = attn_type != "none" and attn_type is not None
        self.bidirectional_encoder = bidirectional_encoder
        self.num_layers = num_layers
        self.hidden_size = hidden_size
        self.emb_dim = emb_dim
        self.dropout_p = dropout  # p=0 -> identity
        self.state = {}

        H, E, V = hidden_size, emb_dim, vocab_size
        keys = jax.random.split(jax.random.PRNGKey(seed), 8)
        scale = 1.0 / jnp.sqrt(jnp.float32(H))
        # embedding table
        self.embedding = jax.random.normal(keys[0], (V, E), jnp.float32) * 0.1
        # LSTM params (pre-transposed for x @ W); f32 kept for parity with torch.
        self.w_ih = jax.random.uniform(keys[1], (E, 4 * H), jnp.float32, -scale, scale)
        self.w_hh = jax.random.uniform(keys[2], (H, 4 * H), jnp.float32, -scale, scale)
        b_ih = jax.random.uniform(keys[3], (4 * H,), jnp.float32, -scale, scale)
        b_hh = jax.random.uniform(keys[4], (4 * H,), jnp.float32, -scale, scale)
        self.bias = (b_ih + b_hh).reshape(1, 4 * H)
        # attention ('general'): linear_in (H -> H, no bias)
        self.w_a = jax.random.uniform(keys[5], (H, H), jnp.float32, -scale, scale)
        # linear_out (2H -> H, bias=False), split into ctx / query halves
        self.w_out_ctx = jax.random.uniform(keys[6], (H, H), jnp.float32, -scale, scale)
        self.w_out_q = jax.random.uniform(keys[7], (H, H), jnp.float32, -scale, scale)
        # TODO(synk): attn2 / copy_attn / context_gate / coverage are declared in
        # the original __init__ but never exercised by the base-class forward
        # signature (single memory_bank); they are not instantiated here.

    def init_state(self, src, memory_bank, encoder_final):
        def _fix(h):
            if self.bidirectional_encoder:
                h = jnp.concatenate([h[0::2], h[1::2]], axis=2)
            return h
        if isinstance(encoder_final, tuple):
            self.state["hidden"] = tuple(_fix(h) for h in encoder_final)
        else:
            self.state["hidden"] = (_fix(encoder_final),)
        batch = self.state["hidden"][0].shape[1]
        self.state["input_feed"] = jnp.zeros((1, batch, self.hidden_size), jnp.float32)
        self.state["coverage"] = None

    def forward(self, tgt, memory_bank, memory_lengths=None, step=None):
        """tgt: (tgt_len, batch, 1) int32; memory_bank: (src_len, batch, hidden)."""
        T, B, _ = tgt.shape
        S = memory_bank.shape[0]

        # Embedding gather stays in the XLA wrapper (tiny at these sizes).
        # TODO(synk): fold into the kernel with PrefetchScalarGridSpec + pl.Element
        # row gather if launch overhead of the gather ever matters.
        emb = jnp.take(self.embedding, tgt[:, :, 0], axis=0)       # (T, B, E)
        emb_flat = emb.reshape(T * B, self.emb_dim)                # free reshape

        h0 = self.state["hidden"][0][0]                            # (B, H)
        c0 = self.state["hidden"][1][0] if len(self.state["hidden"]) > 1 \
            else jnp.zeros_like(h0)

        # Batch-major memory so the kernel's batched dot_generals use leading
        # batch dims (proven lowering path). Single tiny transpose.
        mem_bsh = jnp.transpose(memory_bank, (1, 0, 2))            # (B, S, H)

        # Attention length mask (GlobalAttention semantics): padded src -> -1e9.
        # NOTE: a fully-masked row yields a uniform distribution here instead of
        # the NaN torch would produce with masked_fill(-inf); deliberate.
        if memory_lengths is None:
            attn_mask = jnp.zeros((B, S), jnp.float32)
        else:
            pos = jnp.arange(S, dtype=jnp.int32)[None, :]
            attn_mask = jnp.where(pos < memory_lengths[:, None].astype(jnp.int32),
                                  0.0, -1e9).astype(jnp.float32)

        dec_outs, p_attn, h_fin, c_fin = decoder_forward(
            emb_flat, mem_bsh, attn_mask, h0, c0,
            self.w_ih, self.w_hh, self.bias,
            self.w_a, self.w_out_ctx, self.w_out_q)
        # Kernel already emits (T, B, H) / (T, B, S): no output transposes needed.
        attns = {"std": p_attn}

        dec_state = (h_fin[None], c_fin[None])                     # (1, B, H) each
        self.state["hidden"] = dec_state
        self.state["input_feed"] = dec_outs[-1][None]
        self.state["coverage"] = None
        return dec_outs, attns


if __name__ == "__main__":
    T, B, S, H, E, V = 8, 2, 8, 32, 32, 50
    key = jax.random.PRNGKey(0)
    k_tgt, k_mem, k_h, k_c = jax.random.split(key, 4)

    tgt = jax.random.randint(k_tgt, (T, B, 1), 0, V, dtype=jnp.int32)
    memory_bank = jax.random.normal(k_mem, (S, B, H), jnp.float32)
    memory_lengths = jnp.array([S, S - 2], dtype=jnp.int32)
    encoder_final = (jax.random.normal(k_h, (1, B, H), jnp.float32) * 0.1,
                     jax.random.normal(k_c, (1, B, H), jnp.float32) * 0.1)

    dec = RNNDecoderBasePallas(hidden_size=H, emb_dim=E, vocab_size=V)
    dec.init_state(None, memory_bank, encoder_final)
    dec_outs, attns = dec.forward(tgt, memory_bank, memory_lengths=memory_lengths)

    jax.block_until_ready((dec_outs, attns["std"]))
    assert dec_outs.shape == (T, B, H)
    assert attns["std"].shape == (T, B, S)
    assert bool(jnp.all(jnp.isfinite(dec_outs)))
    assert bool(jnp.all(jnp.isfinite(attns["std"])))
    print("KERNEL_OK")
</pallas_src>

<mosaic_0001>
module attributes {stable_mosaic.version = 11 : i64} {
  func.func @_decoder_fused_kernel(%arg0: memref<16x32xf32, #tpu.memory_space<vmem>>, %arg1: memref<2x8x32xf32, #tpu.memory_space<vmem>>, %arg2: memref<2x8xf32, #tpu.memory_space<vmem>>, %arg3: memref<2x32xf32, #tpu.memory_space<vmem>>, %arg4: memref<2x32xf32, #tpu.memory_space<vmem>>, %arg5: memref<32x128xf32, #tpu.memory_space<vmem>>, %arg6: memref<32x128xf32, #tpu.memory_space<vmem>>, %arg7: memref<1x128xf32, #tpu.memory_space<vmem>>, %arg8: memref<32x32xf32, #tpu.memory_space<vmem>>, %arg9: memref<32x32xf32, #tpu.memory_space<vmem>>, %arg10: memref<32x32xf32, #tpu.memory_space<vmem>>, %arg11: memref<8x2x32xf32, #tpu.memory_space<vmem>>, %arg12: memref<8x2x8xf32, #tpu.memory_space<vmem>>, %arg13: memref<2x32xf32, #tpu.memory_space<vmem>>, %arg14: memref<2x32xf32, #tpu.memory_space<vmem>>, %arg15: memref<2x8x32xf32, #tpu.memory_space<vmem>>) attributes {dimension_semantics = [], scalar_prefetch = 0 : i64, scratch_operands = 1 : i64, tpu.core_type = #tpu.core_type<tc>} {
    %c0 = arith.constant 0 : index
    %c0_0 = arith.constant 0 : index
    %0 = vector.load %arg0[%c0, %c0_0] : memref<16x32xf32, #tpu.memory_space<vmem>>, vector<16x32xf32>
    %c0_1 = arith.constant 0 : index
    %c0_2 = arith.constant 0 : index
    %1 = vector.load %arg5[%c0_1, %c0_2] : memref<32x128xf32, #tpu.memory_space<vmem>>, vector<32x128xf32>
    %cst = arith.constant dense<0.000000e+00> : vector<16x128xf32>
    %2 = tpu.matmul %0, %1, %cst {dimension_numbers = #tpu.dot_dimension_numbers<[1], [0], [0], [1], [0, 0, 1, 1], [], []>} : vector<16x32xf32>, vector<32x128xf32>, vector<16x128xf32> -> vector<16x128xf32>
    %c0_3 = arith.constant 0 : index
    %c0_4 = arith.constant 0 : index
    %3 = vector.load %arg7[%c0_3, %c0_4] : memref<1x128xf32, #tpu.memory_space<vmem>>, vector<1x128xf32>
    %4 = vector.broadcast %3 : vector<1x128xf32> to vector<16x128xf32>
    %5 = arith.addf %2, %4 : vector<16x128xf32>
    %c0_5 = arith.constant 0 : index
    %c0_6 = arith.constant 0 : index
    %6 = vector.load %arg6[%c0_5, %c0_6] : memref<32x128xf32, #tpu.memory_space<vmem>>, vector<32x128xf32>
    %c0_7 = arith.constant 0 : index
    %c0_8 = arith.constant 0 : index
    %7 = vector.load %arg3[%c0_7, %c0_8] : memref<2x32xf32, #tpu.memory_space<vmem>>, vector<2x32xf32>
    %c0_9 = arith.constant 0 : index
    %c0_10 = arith.constant 0 : index
    %8 = vector.load %arg4[%c0_9, %c0_10] : memref<2x32xf32, #tpu.memory_space<vmem>>, vector<2x32xf32>
    %9 = vector.extract_strided_slice %5 {offsets = [0, 0], sizes = [2, 128], strides = [1, 1]} : vector<16x128xf32> to vector<2x128xf32>
    %cst_11 = arith.constant dense<0.000000e+00> : vector<2x128xf32>
    %10 = tpu.matmul %7, %6, %cst_11 {dimension_numbers = #tpu.dot_dimension_numbers<[1], [0], [0], [1], [0, 0, 1, 1], [], []>} : vector<2x32xf32>, vector<32x128xf32>, vector<2x128xf32> -> vector<2x128xf32>
    %11 = arith.addf %9, %10 : vector<2x128xf32>
    %12 = arith.negf %11 : vector<2x128xf32>
    %13 = math.exp %12 : vector<2x128xf32>
    %cst_12 = arith.constant 1.000000e+00 : f32
    %14 = vector.broadcast %cst_12 : f32 to vector<2x128xf32>
    %15 = arith.addf %14, %13 : vector<2x128xf32>
    %16 = arith.divf %14, %15 : vector<2x128xf32>
    %17 = math.tanh %11 : vector<2x128xf32>
    %18 = vector.extract_strided_slice %16 {offsets = [0, 0], sizes = [2, 32], strides = [1, 1]} : vector<2x128xf32> to vector<2x32xf32>
    %19 = vector.extract_strided_slice %16 {offsets = [0, 32], sizes = [2, 32], strides = [1, 1]} : vector<2x128xf32> to vector<2x32xf32>
    %20 = vector.extract_strided_slice %17 {offsets = [0, 64], sizes = [2, 32], strides = [1, 1]} : vector<2x128xf32> to vector<2x32xf32>
    %21 = vector.extract_strided_slice %16 {offsets = [0, 96], sizes = [2, 32], strides = [1, 1]} : vector<2x128xf32> to vector<2x32xf32>
    %22 = arith.mulf %19, %8 : vector<2x32xf32>
    %23 = arith.mulf %18, %20 : vector<2x32xf32>
    %24 = arith.addf %22, %23 : vector<2x32xf32>
    %25 = math.tanh %24 : vector<2x32xf32>
    %26 = arith.mulf %21, %25 : vector<2x32xf32>
    %c0_13 = arith.constant 0 : index
    %c0_14 = arith.constant 0 : index
    %c0_15 = arith.constant 0 : index
    %27 = vector.load %arg15[%c0_13, %c0_14, %c0_15] : memref<2x8x32xf32, #tpu.memory_space<vmem>>, vector<2x1x32xf32>
    %28 = vector.shape_cast %27 : vector<2x1x32xf32> to vector<2x32xf32>
    %29 = vector.shape_cast %26 : vector<2x32xf32> to vector<2x1x32xf32>
    tpu.vector_store %arg15[%c0_13, %c0_14, %c0_15], %29 {strides = array<i32>} : memref<2x8x32xf32, #tpu.memory_space<vmem>>, vector<2x1x32xf32>,
    %30 = vector.extract_strided_slice %5 {offsets = [2, 0], sizes = [2, 128], strides = [1, 1]} : vector<16x128xf32> to vector<2x128xf32>
    %cst_16 = arith.constant dense<0.000000e+00> : vector<2x128xf32>
    %31 = tpu.matmul %26, %6, %cst_16 {dimension_numbers = #tpu.dot_dimension_numbers<[1], [0], [0], [1], [0, 0, 1, 1], [], []>} : vector<2x32xf32>, vector<32x128xf32>, vector<2x128xf32> -> vector<2x128xf32>
    %32 = arith.addf %30, %31 : vector<2x128xf32>
    %33 = arith.negf %32 : vector<2x128xf32>
    %34 = math.exp %33 : vector<2x128xf32>
    %cst_17 = arith.constant 1.000000e+00 : f32
    %35 = vector.broadcast %cst_17 : f32 to vector<2x128xf32>
    %36 = arith.addf %35, %34 : vector<2x128xf32>
    %37 = arith.divf %35, %36 : vector<2x128xf32>
    %38 = math.tanh %32 : vector<2x128xf32>
    %39 = vector.extract_strided_slice %37 {offsets = [0, 0], sizes = [2, 32], strides = [1, 1]} : vector<2x128xf32> to vector<2x32xf32>
    %40 = vector.extract_strided_slice %37 {offsets = [0, 32], sizes = [2, 32], strides = [1, 1]} : vector<2x128xf32> to vector<2x32xf32>
    %41 = vector.extract_strided_slice %38 {offsets = [0, 64], sizes = [2, 32], strides = [1, 1]} : vector<2x128xf32> to vector<2x32xf32>
    %42 = vector.extract_strided_slice %37 {offsets = [0, 96], sizes = [2, 32], strides = [1, 1]} : vector<2x128xf32> to vector<2x32xf32>
    %43 = arith.mulf %40, %24 : vector<2x32xf32>
    %44 = arith.mulf %39, %41 : vector<2x32xf32>
    %45 = arith.addf %43, %44 : vector<2x32xf32>
    %46 = math.tanh %45 : vector<2x32xf32>
    %47 = arith.mulf %42, %46 : vector<2x32xf32>
    %c0_18 = arith.constant 0 : index
    %c1 = arith.constant 1 : index
    %c0_19 = arith.constant 0 : index
    %48 = vector.load %arg15[%c0_18, %c1, %c0_19] : memref<2x8x32xf32, #tpu.memory_space<vmem>>, vector<2x1x32xf32>
    %49 = vector.shape_cast %48 : vector<2x1x32xf32> to vector<2x32xf32>
    %50 = vector.shape_cast %47 : vector<2x32xf32> to vector<2x1x32xf32>
    tpu.vector_store %arg15[%c0_18, %c1, %c0_19], %50 {strides = array<i32>} : memref<2x8x32xf32, #tpu.memory_space<vmem>>, vector<2x1x32xf32>,
    %51 = vector.extract_strided_slice %5 {offsets = [4, 0], sizes = [2, 128], strides = [1, 1]} : vector<16x128xf32> to vector<2x128xf32>
    %cst_20 = arith.constant dense<0.000000e+00> : vector<2x128xf32>
    %52 = tpu.matmul %47, %6, %cst_20 {dimension_numbers = #tpu.dot_dimension_numbers<[1], [0], [0], [1], [0, 0, 1, 1], [], []>} : vector<2x32xf32>, vector<32x128xf32>, vector<2x128xf32> -> vector<2x128xf32>
    %53 = arith.addf %51, %52 : vector<2x128xf32>
    %54 = arith.negf %53 : vector<2x128xf32>
    %55 = math.exp %54 : vector<2x128xf32>
    %cst_21 = arith.constant 1.000000e+00 : f32
    %56 = vector.broadcast %cst_21 : f32 to vector<2x128xf32>
    %57 = arith.addf %56, %55 : vector<2x128xf32>
    %58 = arith.divf %56, %57 : vector<2x128xf32>
    %59 = math.tanh %53 : vector<2x128xf32>
    %60 = vector.extract_strided_slice %58 {offsets = [0, 0], sizes = [2, 32], strides = [1, 1]} : vector<2x128xf32> to vector<2x32xf32>
    %61 = vector.extract_strided_slice %58 {offsets = [0, 32], sizes = [2, 32], strides = [1, 1]} : vector<2x128xf32> to vector<2x32xf32>
    %62 = vector.extract_strided_slice %59 {offsets = [0, 64], sizes = [2, 32], strides = [1, 1]} : vector<2x128xf32> to vector<2x32xf32>
    %63 = vector.extract_strided_slice %58 {offsets = [0, 96], sizes = [2, 32], strides = [1, 1]} : vector<2x128xf32> to vector<2x32xf32>
    %64 = arith.mulf %61, %45 : vector<2x32xf32>
    %65 = arith.mulf %60, %62 : vector<2x32xf32>
    %66 = arith.addf %64, %65 : vector<2x32xf32>
    %67 = math.tanh %66 : vector<2x32xf32>
    %68 = arith.mulf %63, %67 : vector<2x32xf32>
    %c0_22 = arith.constant 0 : index
    %c2 = arith.constant 2 : index
    %c0_23 = arith.constant 0 : index
    %69 = vector.load %arg15[%c0_22, %c2, %c0_23] : memref<2x8x32xf32, #tpu.memory_space<vmem>>, vector<2x1x32xf32>
    %70 = vector.shape_cast %69 : vector<2x1x32xf32> to vector<2x32xf32>
    %71 = vector.shape_cast %68 : vector<2x32xf32> to vector<2x1x32xf32>
    tpu.vector_store %arg15[%c0_22, %c2, %c0_23], %71 {strides = array<i32>} : memref<2x8x32xf32, #tpu.memory_space<vmem>>, vector<2x1x32xf32>,
    %72 = vector.extract_strided_slice %5 {offsets = [6, 0], sizes = [2, 128], strides = [1, 1]} : vector<16x128xf32> to vector<2x128xf32>
    %cst_24 = arith.constant dense<0.000000e+00> : vector<2x128xf32>
    %73 = tpu.matmul %68, %6, %cst_24 {dimension_numbers = #tpu.dot_dimension_numbers<[1], [0], [0], [1], [0, 0, 1, 1], [], []>} : vector<2x32xf32>, vector<32x128xf32>, vector<2x128xf32> -> vector<2x128xf32>
    %74 = arith.addf %72, %73 : vector<2x128xf32>
    %75 = arith.negf %74 : vector<2x128xf32>
    %76 = math.exp %75 : vector<2x128xf32>
    %cst_25 = arith.constant 1.000000e+00 : f32
    %77 = vector.broadcast %cst_25 : f32 to vector<2x128xf32>
    %78 = arith.addf %77, %76 : vector<2x128xf32>
    %79 = arith.divf %77, %78 : vector<2x128xf32>
    %80 = math.tanh %74 : vector<2x128xf32>
    %81 = vector.extract_strided_slice %79 {offsets = [0, 0], sizes = [2, 32], strides = [1, 1]} : vector<2x128xf32> to vector<2x32xf32>
    %82 = vector.extract_strided_slice %79 {offsets = [0, 32], sizes = [2, 32], strides = [1, 1]} : vector<2x128xf32> to vector<2x32xf32>
    %83 = vector.extract_strided_slice %80 {offsets = [0, 64], sizes = [2, 32], strides = [1, 1]} : vector<2x128xf32> to vector<2x32xf32>
    %84 = vector.extract_strided_slice %79 {offsets = [0, 96], sizes = [2, 32], strides = [1, 1]} : vector<2x128xf32> to vector<2x32xf32>
    %85 = arith.mulf %82, %66 : vector<2x32xf32>
    %86 = arith.mulf %81, %83 : vector<2x32xf32>
    %87 = arith.addf %85, %86 : vector<2x32xf32>
    %88 = math.tanh %87 : vector<2x32xf32>
    %89 = arith.mulf %84, %88 : vector<2x32xf32>
    %c0_26 = arith.constant 0 : index
    %c3 = arith.constant 3 : index
    %c0_27 = arith.constant 0 : index
    %90 = vector.load %arg15[%c0_26, %c3, %c0_27] : memref<2x8x32xf32, #tpu.memory_space<vmem>>, vector<2x1x32xf32>
    %91 = vector.shape_cast %90 : vector<2x1x32xf32> to vector<2x32xf32>
    %92 = vector.shape_cast %89 : vector<2x32xf32> to vector<2x1x32xf32>
    tpu.vector_store %arg15[%c0_26, %c3, %c0_27], %92 {strides = array<i32>} : memref<2x8x32xf32, #tpu.memory_space<vmem>>, vector<2x1x32xf32>,
    %93 = vector.extract_strided_slice %5 {offsets = [8, 0], sizes = [2, 128], strides = [1, 1]} : vector<16x128xf32> to vector<2x128xf32>
    %cst_28 = arith.constant dense<0.000000e+00> : vector<2x128xf32>
    %94 = tpu.matmul %89, %6, %cst_28 {dimension_numbers = #tpu.dot_dimension_numbers<[1], [0], [0], [1], [0, 0, 1, 1], [], []>} : vector<2x32xf32>, vector<32x128xf32>, vector<2x128xf32> -> vector<2x128xf32>
    %95 = arith.addf %93, %94 : vector<2x128xf32>
    %96 = arith.negf %95 : vector<2x128xf32>
    %97 = math.exp %96 : vector<2x128xf32>
    %cst_29 = arith.constant 1.000000e+00 : f32
    %98 = vector.broadcast %cst_29 : f32 to vector<2x128xf32>
    %99 = arith.addf %98, %97 : vector<2x128xf32>
    %100 = arith.divf %98, %99 : vector<2x128xf32>
    %101 = math.tanh %95 : vector<2x128xf32>
    %102 = vector.extract_strided_slice %100 {offsets = [0, 0], sizes = [2, 32], strides = [1, 1]} : vector<2x128xf32> to vector<2x32xf32>
    %103 = vector.extract_strided_slice %100 {offsets = [0, 32], sizes = [2, 32], strides = [1, 1]} : vector<2x128xf32> to vector<2x32xf32>
    %104 = vector.extract_strided_slice %101 {offsets = [0, 64], sizes = [2, 32], strides = [1, 1]} : vector<2x128xf32> to vector<2x32xf32>
    %105 = vector.extract_strided_slice %100 {offsets = [0, 96], sizes = [2, 32], strides = [1, 1]} : vector<2x128xf32> to vector<2x32xf32>
    %106 = arith.mulf %103, %87 : vector<2x32xf32>
    %107 = arith.mulf %102, %104 : vector<2x32xf32>
    %108 = arith.addf %106, %107 : vector<2x32xf32>
    %109 = math.tanh %108 : vector<2x32xf32>
    %110 = arith.mulf %105, %109 : vector<2x32xf32>
    %c0_30 = arith.constant 0 : index
    %c4 = arith.constant 4 : index
    %c0_31 = arith.constant 0 : index
    %111 = vector.load %arg15[%c0_30, %c4, %c0_31] : memref<2x8x32xf32, #tpu.memory_space<vmem>>, vector<2x1x32xf32>
    %112 = vector.shape_cast %111 : vector<2x1x32xf32> to vector<2x32xf32>
    %113 = vector.shape_cast %110 : vector<2x32xf32> to vector<2x1x32xf32>
    tpu.vector_store %arg15[%c0_30, %c4, %c0_31], %113 {strides = array<i32>} : memref<2x8x32xf32, #tpu.memory_space<vmem>>, vector<2x1x32xf32>,
    %114 = vector.extract_strided_slice %5 {offsets = [10, 0], sizes = [2, 128], strides = [1, 1]} : vector<16x128xf32> to vector<2x128xf32>
    %cst_32 = arith.constant dense<0.000000e+00> : vector<2x128xf32>
    %115 = tpu.matmul %110, %6, %cst_32 {dimension_numbers = #tpu.dot_dimension_numbers<[1], [0], [0], [1], [0, 0, 1, 1], [], []>} : vector<2x32xf32>, vector<32x128xf32>, vector<2x128xf32> -> vector<2x128xf32>
    %116 = arith.addf %114, %115 : vector<2x128xf32>
    %117 = arith.negf %116 : vector<2x128xf32>
    %118 = math.exp %117 : vector<2x128xf32>
    %cst_33 = arith.constant 1.000000e+00 : f32
    %119 = vector.broadcast %cst_33 : f32 to vector<2x128xf32>
    %120 = arith.addf %119, %118 : vector<2x128xf32>
    %121 = arith.divf %119, %120 : vector<2x128xf32>
    %122 = math.tanh %116 : vector<2x128xf32>
    %123 = vector.extract_strided_slice %121 {offsets = [0, 0], sizes = [2, 32], strides = [1, 1]} : vector<2x128xf32> to vector<2x32xf32>
    %124 = vector.extract_strided_slice %121 {offsets = [0, 32], sizes = [2, 32], strides = [1, 1]} : vector<2x128xf32> to vector<2x32xf32>
    %125 = vector.extract_strided_slice %122 {offsets = [0, 64], sizes = [2, 32], strides = [1, 1]} : vector<2x128xf32> to vector<2x32xf32>
    %126 = vector.extract_strided_slice %121 {offsets = [0, 96], sizes = [2, 32], strides = [1, 1]} : vector<2x128xf32> to vector<2x32xf32>
    %127 = arith.mulf %124, %108 : vector<2x32xf32>
    %128 = arith.mulf %123, %125 : vector<2x32xf32>
    %129 = arith.addf %127, %128 : vector<2x32xf32>
    %130 = math.tanh %129 : vector<2x32xf32>
    %131 = arith.mulf %126, %130 : vector<2x32xf32>
    %c0_34 = arith.constant 0 : index
    %c5 = arith.constant 5 : index
    %c0_35 = arith.constant 0 : index
    %132 = vector.load %arg15[%c0_34, %c5, %c0_35] : memref<2x8x32xf32, #tpu.memory_space<vmem>>, vector<2x1x32xf32>
    %133 = vector.shape_cast %132 : vector<2x1x32xf32> to vector<2x32xf32>
    %134 = vector.shape_cast %131 : vector<2x32xf32> to vector<2x1x32xf32>
    tpu.vector_store %arg15[%c0_34, %c5, %c0_35], %134 {strides = array<i32>} : memref<2x8x32xf32, #tpu.memory_space<vmem>>, vector<2x1x32xf32>,
    %135 = vector.extract_strided_slice %5 {offsets = [12, 0], sizes = [2, 128], strides = [1, 1]} : vector<16x128xf32> to vector<2x128xf32>
    %cst_36 = arith.constant dense<0.000000e+00> : vector<2x128xf32>
    %136 = tpu.matmul %131, %6, %cst_36 {dimension_numbers = #tpu.dot_dimension_numbers<[1], [0], [0], [1], [0, 0, 1, 1], [], []>} : vector<2x32xf32>, vector<32x128xf32>, vector<2x128xf32> -> vector<2x128xf32>
    %137 = arith.addf %135, %136 : vector<2x128xf32>
    %138 = arith.negf %137 : vector<2x128xf32>
    %139 = math.exp %138 : vector<2x128xf32>
    %cst_37 = arith.constant 1.000000e+00 : f32
    %140 = vector.broadcast %cst_37 : f32 to vector<2x128xf32>
    %141 = arith.addf %140, %139 : vector<2x128xf32>
    %142 = arith.divf %140, %141 : vector<2x128xf32>
    %143 = math.tanh %137 : vector<2x128xf32>
    %144 = vector.extract_strided_slice %142 {offsets = [0, 0], sizes = [2, 32], strides = [1, 1]} : vector<2x128xf32> to vector<2x32xf32>
    %145 = vector.extract_strided_slice %142 {offsets = [0, 32], sizes = [2, 32], strides = [1, 1]} : vector<2x128xf32> to vector<2x32xf32>
    %146 = vector.extract_strided_slice %143 {offsets = [0, 64], sizes = [2, 32], strides = [1, 1]} : vector<2x128xf32> to vector<2x32xf32>
    %147 = vector.extract_strided_slice %142 {offsets = [0, 96], sizes = [2, 32], strides = [1, 1]} : vector<2x128xf32> to vector<2x32xf32>
    %148 = arith.mulf %145, %129 : vector<2x32xf32>
    %149 = arith.mulf %144, %146 : vector<2x32xf32>
    %150 = arith.addf %148, %149 : vector<2x32xf32>
    %151 = math.tanh %150 : vector<2x32xf32>
    %152 = arith.mulf %147, %151 : vector<2x32xf32>
    %c0_38 = arith.constant 0 : index
    %c6 = arith.constant 6 : index
    %c0_39 = arith.constant 0 : index
    %153 = vector.load %arg15[%c0_38, %c6, %c0_39] : memref<2x8x32xf32, #tpu.memory_space<vmem>>, vector<2x1x32xf32>
    %154 = vector.shape_cast %153 : vector<2x1x32xf32> to vector<2x32xf32>
    %155 = vector.shape_cast %152 : vector<2x32xf32> to vector<2x1x32xf32>
    tpu.vector_store %arg15[%c0_38, %c6, %c0_39], %155 {strides = array<i32>} : memref<2x8x32xf32, #tpu.memory_space<vmem>>, vector<2x1x32xf32>,
    %156 = vector.extract_strided_slice %5 {offsets = [14, 0], sizes = [2, 128], strides = [1, 1]} : vector<16x128xf32> to vector<2x128xf32>
    %cst_40 = arith.constant dense<0.000000e+00> : vector<2x128xf32>
    %157 = tpu.matmul %152, %6, %cst_40 {dimension_numbers = #tpu.dot_dimension_numbers<[1], [0], [0], [1], [0, 0, 1, 1], [], []>} : vector<2x32xf32>, vector<32x128xf32>, vector<2x128xf32> -> vector<2x128xf32>
    %158 = arith.addf %156, %157 : vector<2x128xf32>
    %159 = arith.negf %158 : vector<2x128xf32>
    %160 = math.exp %159 : vector<2x128xf32>
    %cst_41 = arith.constant 1.000000e+00 : f32
    %161 = vector.broadcast %cst_41 : f32 to vector<2x128xf32>
    %162 = arith.addf %161, %160 : vector<2x128xf32>
    %163 = arith.divf %161, %162 : vector<2x128xf32>
    %164 = math.tanh %158 : vector<2x128xf32>
    %165 = vector.extract_strided_slice %163 {offsets = [0, 0], sizes = [2, 32], strides = [1, 1]} : vector<2x128xf32> to vector<2x32xf32>
    %166 = vector.extract_strided_slice %163 {offsets = [0, 32], sizes = [2, 32], strides = [1, 1]} : vector<2x128xf32> to vector<2x32xf32>
    %167 = vector.extract_strided_slice %164 {offsets = [0, 64], sizes = [2, 32], strides = [1, 1]} : vector<2x128xf32> to vector<2x32xf32>
    %168 = vector.extract_strided_slice %163 {offsets = [0, 96], sizes = [2, 32], strides = [1, 1]} : vector<2x128xf32> to vector<2x32xf32>
    %169 = arith.mulf %166, %150 : vector<2x32xf32>
    %170 = arith.mulf %165, %167 : vector<2x32xf32>
    %171 = arith.addf %169, %170 : vector<2x32xf32>
    %172 = math.tanh %171 : vector<2x32xf32>
    %173 = arith.mulf %168, %172 : vector<2x32xf32>
    %c0_42 = arith.constant 0 : index
    %c7 = arith.constant 7 : index
    %c0_43 = arith.constant 0 : index
    %174 = vector.load %arg15[%c0_42, %c7, %c0_43] : memref<2x8x32xf32, #tpu.memory_space<vmem>>, vector<2x1x32xf32>
    %175 = vector.shape_cast %174 : vector<2x1x32xf32> to vector<2x32xf32>
    %176 = vector.shape_cast %173 : vector<2x32xf32> to vector<2x1x32xf32>
    tpu.vector_store %arg15[%c0_42, %c7, %c0_43], %176 {strides = array<i32>} : memref<2x8x32xf32, #tpu.memory_space<vmem>>, vector<2x1x32xf32>,
    %c0_44 = arith.constant 0 : index
    %c0_45 = arith.constant 0 : index
    %177 = vector.load %arg13[%c0_44, %c0_45] : memref<2x32xf32, #tpu.memory_space<vmem>>, vector<2x32xf32>
    tpu.vector_store %arg13[%c0_44, %c0_45], %173 {strides = array<i32>} : memref<2x32xf32, #tpu.memory_space<vmem>>, vector<2x32xf32>,
    %c0_46 = arith.constant 0 : index
    %c0_47 = arith.constant 0 : index
    %178 = vector.load %arg14[%c0_46, %c0_47] : memref<2x32xf32, #tpu.memory_space<vmem>>, vector<2x32xf32>
    tpu.vector_store %arg14[%c0_46, %c0_47], %171 {strides = array<i32>} : memref<2x32xf32, #tpu.memory_space<vmem>>, vector<2x32xf32>,
    %c0_48 = arith.constant 0 : index
    %c0_49 = arith.constant 0 : index
    %c0_50 = arith.constant 0 : index
    %179 = vector.load %arg15[%c0_48, %c0_49, %c0_50] : memref<2x8x32xf32, #tpu.memory_space<vmem>>, vector<2x8x32xf32>
    %180 = vector.shape_cast %179 : vector<2x8x32xf32> to vector<16x32xf32>
    %c0_51 = arith.constant 0 : index
    %c0_52 = arith.constant 0 : index
    %181 = vector.load %arg8[%c0_51, %c0_52] : memref<32x32xf32, #tpu.memory_space<vmem>>, vector<32x32xf32>
    %cst_53 = arith.constant dense<0.000000e+00> : vector<16x32xf32>
    %182 = tpu.matmul %180, %181, %cst_53 {dimension_numbers = #tpu.dot_dimension_numbers<[1], [0], [0], [1], [0, 0, 1, 1], [], []>} : vector<16x32xf32>, vector<32x32xf32>, vector<16x32xf32> -> vector<16x32xf32>
    %183 = vector.shape_cast %182 : vector<16x32xf32> to vector<2x8x32xf32>
    %c0_54 = arith.constant 0 : index
    %c0_55 = arith.constant 0 : index
    %c0_56 = arith.constant 0 : index
    %184 = vector.load %arg1[%c0_54, %c0_55, %c0_56] : memref<2x8x32xf32, #tpu.memory_space<vmem>>, vector<2x8x32xf32>
    %cst_57 = arith.constant dense<0.000000e+00> : vector<2x8x8xf32>
    %185 = tpu.matmul %183, %184, %cst_57 {dimension_numbers = #tpu.dot_dimension_numbers<[2], [2], [1], [1], [0, 0, 0, 1, 1, 1], [0], [0]>} : vector<2x8x32xf32>, vector<2x8x32xf32>, vector<2x8x8xf32> -> vector<2x8x8xf32>
    %c0_58 = arith.constant 0 : index
    %c0_59 = arith.constant 0 : index
    %186 = vector.load %arg2[%c0_58, %c0_59] : memref<2x8xf32, #tpu.memory_space<vmem>>, vector<2x8xf32>
    %187 = vector.shape_cast %186 : vector<2x8xf32> to vector<2x1x8xf32>
    %188 = vector.broadcast %187 : vector<2x1x8xf32> to vector<2x8x8xf32>
    %189 = arith.addf %185, %188 : vector<2x8x8xf32>
    %cst_60 = arith.constant dense<0xFF800000> : vector<2x8xf32>
    %190 = vector.multi_reduction <maximumf>, %189, %cst_60 [2] : vector<2x8x8xf32> to vector<2x8xf32>
    %191 = vector.shape_cast %190 : vector<2x8xf32> to vector<2x8x1xf32>
    %192 = vector.broadcast %191 : vector<2x8x1xf32> to vector<2x8x8xf32>
    %193 = arith.subf %189, %192 : vector<2x8x8xf32>
    %194 = math.exp %193 : vector<2x8x8xf32>
    %cst_61 = arith.constant dense<0.000000e+00> : vector<2x8xf32>
    %195 = vector.multi_reduction <add>, %194, %cst_61 [2] : vector<2x8x8xf32> to vector<2x8xf32>
    %196 = vector.shape_cast %195 : vector<2x8xf32> to vector<2x8x1xf32>
    %197 = vector.broadcast %196 : vector<2x8x1xf32> to vector<2x8x8xf32>
    %198 = arith.divf %194, %197 : vector<2x8x8xf32>
    %cst_62 = arith.constant dense<0.000000e+00> : vector<2x8x32xf32>
    %199 = tpu.matmul %198, %184, %cst_62 {dimension_numbers = #tpu.dot_dimension_numbers<[2], [1], [1], [2], [0, 0, 0, 1, 1, 2], [0], [0]>} : vector<2x8x8xf32>, vector<2x8x32xf32>, vector<2x8x32xf32> -> vector<2x8x32xf32>
    %200 = vector.shape_cast %199 : vector<2x8x32xf32> to vector<16x32xf32>
    %c0_63 = arith.constant 0 : index
    %c0_64 = arith.constant 0 : index
    %201 = vector.load %arg9[%c0_63, %c0_64] : memref<32x32xf32, #tpu.memory_space<vmem>>, vector<32x32xf32>
    %cst_65 = arith.constant dense<0.000000e+00> : vector<16x32xf32>
    %202 = tpu.matmul %200, %201, %cst_65 {dimension_numbers = #tpu.dot_dimension_numbers<[1], [0], [0], [1], [0, 0, 1, 1], [], []>} : vector<16x32xf32>, vector<32x32xf32>, vector<16x32xf32> -> vector<16x32xf32>
    %c0_66 = arith.constant 0 : index
    %c0_67 = arith.constant 0 : index
    %203 = vector.load %arg10[%c0_66, %c0_67] : memref<32x32xf32, #tpu.memory_space<vmem>>, vector<32x32xf32>
    %cst_68 = arith.constant dense<0.000000e+00> : vector<16x32xf32>
    %204 = tpu.matmul %180, %203, %cst_68 {dimension_numbers = #tpu.dot_dimension_numbers<[1], [0], [0], [1], [0, 0, 1, 1], [], []>} : vector<16x32xf32>, vector<32x32xf32>, vector<16x32xf32> -> vector<16x32xf32>
    %205 = arith.addf %202, %204 : vector<16x32xf32>
    %206 = math.tanh %205 : vector<16x32xf32>
    %207 = vector.shape_cast %206 : vector<16x32xf32> to vector<2x8x32xf32>
    %208 = vector.extract_strided_slice %207 {offsets = [0, 0, 0], sizes = [2, 1, 32], strides = [1, 1, 1]} : vector<2x8x32xf32> to vector<2x1x32xf32>
    %209 = vector.shape_cast %208 : vector<2x1x32xf32> to vector<2x32xf32>
    %c0_69 = arith.constant 0 : index
    %c0_70 = arith.constant 0 : index
    %c0_71 = arith.constant 0 : index
    %210 = vector.load %arg11[%c0_69, %c0_70, %c0_71] : memref<8x2x32xf32, #tpu.memory_space<vmem>>, vector<1x2x32xf32>
    %211 = vector.shape_cast %210 : vector<1x2x32xf32> to vector<2x32xf32>
    %212 = vector.shape_cast %209 : vector<2x32xf32> to vector<1x2x32xf32>
    tpu.vector_store %arg11[%c0_69, %c0_70, %c0_71], %212 {strides = array<i32>} : memref<8x2x32xf32, #tpu.memory_space<vmem>>, vector<1x2x32xf32>,
    %213 = vector.extract_strided_slice %198 {offsets = [0, 0, 0], sizes = [2, 1, 8], strides = [1, 1, 1]} : vector<2x8x8xf32> to vector<2x1x8xf32>
    %214 = vector.shape_cast %213 : vector<2x1x8xf32> to vector<2x8xf32>
    %c0_72 = arith.constant 0 : index
    %c0_73 = arith.constant 0 : index
    %c0_74 = arith.constant 0 : index
    %215 = vector.load %arg12[%c0_72, %c0_73, %c0_74] : memref<8x2x8xf32, #tpu.memory_space<vmem>>, vector<1x2x8xf32>
    %216 = vector.shape_cast %215 : vector<1x2x8xf32> to vector<2x8xf32>
    %217 = vector.shape_cast %214 : vector<2x8xf32> to vector<1x2x8xf32>
    tpu.vector_store %arg12[%c0_72, %c0_73, %c0_74], %217 {strides = array<i32>} : memref<8x2x8xf32, #tpu.memory_space<vmem>>, vector<1x2x8xf32>,
    %218 = vector.extract_strided_slice %207 {offsets = [0, 1, 0], sizes = [2, 1, 32], strides = [1, 1, 1]} : vector<2x8x32xf32> to vector<2x1x32xf32>
    %219 = vector.shape_cast %218 : vector<2x1x32xf32> to vector<2x32xf32>
    %c1_75 = arith.constant 1 : index
    %c0_76 = arith.constant 0 : index
    %c0_77 = arith.constant 0 : index
    %220 = vector.load %arg11[%c1_75, %c0_76, %c0_77] : memref<8x2x32xf32, #tpu.memory_space<vmem>>, vector<1x2x32xf32>
    %221 = vector.shape_cast %220 : vector<1x2x32xf32> to vector<2x32xf32>
    %222 = vector.shape_cast %219 : vector<2x32xf32> to vector<1x2x32xf32>
    tpu.vector_store %arg11[%c1_75, %c0_76, %c0_77], %222 {strides = array<i32>} : memref<8x2x32xf32, #tpu.memory_space<vmem>>, vector<1x2x32xf32>,
    %223 = vector.extract_strided_slice %198 {offsets = [0, 1, 0], sizes = [2, 1, 8], strides = [1, 1, 1]} : vector<2x8x8xf32> to vector<2x1x8xf32>
    %224 = vector.shape_cast %223 : vector<2x1x8xf32> to vector<2x8xf32>
    %c1_78 = arith.constant 1 : index
    %c0_79 = arith.constant 0 : index
    %c0_80 = arith.constant 0 : index
    %225 = vector.load %arg12[%c1_78, %c0_79, %c0_80] : memref<8x2x8xf32, #tpu.memory_space<vmem>>, vector<1x2x8xf32>
    %226 = vector.shape_cast %225 : vector<1x2x8xf32> to vector<2x8xf32>
    %227 = vector.shape_cast %224 : vector<2x8xf32> to vector<1x2x8xf32>
    tpu.vector_store %arg12[%c1_78, %c0_79, %c0_80], %227 {strides = array<i32>} : memref<8x2x8xf32, #tpu.memory_space<vmem>>, vector<1x2x8xf32>,
    %228 = vector.extract_strided_slice %207 {offsets = [0, 2, 0], sizes = [2, 1, 32], strides = [1, 1, 1]} : vector<2x8x32xf32> to vector<2x1x32xf32>
    %229 = vector.shape_cast %228 : vector<2x1x32xf32> to vector<2x32xf32>
    %c2_81 = arith.constant 2 : index
    %c0_82 = arith.constant 0 : index
    %c0_83 = arith.constant 0 : index
    %230 = vector.load %arg11[%c2_81, %c0_82, %c0_83] : memref<8x2x32xf32, #tpu.memory_space<vmem>>, vector<1x2x32xf32>
    %231 = vector.shape_cast %230 : vector<1x2x32xf32> to vector<2x32xf32>
    %232 = vector.shape_cast %229 : vector<2x32xf32> to vector<1x2x32xf32>
    tpu.vector_store %arg11[%c2_81, %c0_82, %c0_83], %232 {strides = array<i32>} : memref<8x2x32xf32, #tpu.memory_space<vmem>>, vector<1x2x32xf32>,
    %233 = vector.extract_strided_slice %198 {offsets = [0, 2, 0], sizes = [2, 1, 8], strides = [1, 1, 1]} : vector<2x8x8xf32> to vector<2x1x8xf32>
    %234 = vector.shape_cast %233 : vector<2x1x8xf32> to vector<2x8xf32>
    %c2_84 = arith.constant 2 : index
    %c0_85 = arith.constant 0 : index
    %c0_86 = arith.constant 0 : index
    %235 = vector.load %arg12[%c2_84, %c0_85, %c0_86] : memref<8x2x8xf32, #tpu.memory_space<vmem>>, vector<1x2x8xf32>
    %236 = vector.shape_cast %235 : vector<1x2x8xf32> to vector<2x8xf32>
    %237 = vector.shape_cast %234 : vector<2x8xf32> to vector<1x2x8xf32>
    tpu.vector_store %arg12[%c2_84, %c0_85, %c0_86], %237 {strides = array<i32>} : memref<8x2x8xf32, #tpu.memory_space<vmem>>, vector<1x2x8xf32>,
    %238 = vector.extract_strided_slice %207 {offsets = [0, 3, 0], sizes = [2, 1, 32], strides = [1, 1, 1]} : vector<2x8x32xf32> to vector<2x1x32xf32>
    %239 = vector.shape_cast %238 : vector<2x1x32xf32> to vector<2x32xf32>
    %c3_87 = arith.constant 3 : index
    %c0_88 = arith.constant 0 : index
    %c0_89 = arith.constant 0 : index
    %240 = vector.load %arg11[%c3_87, %c0_88, %c0_89] : memref<8x2x32xf32, #tpu.memory_space<vmem>>, vector<1x2x32xf32>
    %241 = vector.shape_cast %240 : vector<1x2x32xf32> to vector<2x32xf32>
    %242 = vector.shape_cast %239 : vector<2x32xf32> to vector<1x2x32xf32>
    tpu.vector_store %arg11[%c3_87, %c0_88, %c0_89], %242 {strides = array<i32>} : memref<8x2x32xf32, #tpu.memory_space<vmem>>, vector<1x2x32xf32>,
    %243 = vector.extract_strided_slice %198 {offsets = [0, 3, 0], sizes = [2, 1, 8], strides = [1, 1, 1]} : vector<2x8x8xf32> to vector<2x1x8xf32>
    %244 = vector.shape_cast %243 : vector<2x1x8xf32> to vector<2x8xf32>
    %c3_90 = arith.constant 3 : index
    %c0_91 = arith.constant 0 : index
    %c0_92 = arith.constant 0 : index
    %245 = vector.load %arg12[%c3_90, %c0_91, %c0_92] : memref<8x2x8xf32, #tpu.memory_space<vmem>>, vector<1x2x8xf32>
    %246 = vector.shape_cast %245 : vector<1x2x8xf32> to vector<2x8xf32>
    %247 = vector.shape_cast %244 : vector<2x8xf32> to vector<1x2x8xf32>
    tpu.vector_store %arg12[%c3_90, %c0_91, %c0_92], %247 {strides = array<i32>} : memref<8x2x8xf32, #tpu.memory_space<vmem>>, vector<1x2x8xf32>,
    %248 = vector.extract_strided_slice %207 {offsets = [0, 4, 0], sizes = [2, 1, 32], strides = [1, 1, 1]} : vector<2x8x32xf32> to vector<2x1x32xf32>
    %249 = vector.shape_cast %248 : vector<2x1x32xf32> to vector<2x32xf32>
    %c4_93 = arith.constant 4 : index
    %c0_94 = arith.constant 0 : index
    %c0_95 = arith.constant 0 : index
    %250 = vector.load %arg11[%c4_93, %c0_94, %c0_95] : memref<8x2x32xf32, #tpu.memory_space<vmem>>, vector<1x2x32xf32>
    %251 = vector.shape_cast %250 : vector<1x2x32xf32> to vector<2x32xf32>
    %252 = vector.shape_cast %249 : vector<2x32xf32> to vector<1x2x32xf32>
    tpu.vector_store %arg11[%c4_93, %c0_94, %c0_95], %252 {strides = array<i32>} : memref<8x2x32xf32, #tpu.memory_space<vmem>>, vector<1x2x32xf32>,
    %253 = vector.extract_strided_slice %198 {offsets = [0, 4, 0], sizes = [2, 1, 8], strides = [1, 1, 1]} : vector<2x8x8xf32> to vector<2x1x8xf32>
    %254 = vector.shape_cast %253 : vector<2x1x8xf32> to vector<2x8xf32>
    %c4_96 = arith.constant 4 : index
    %c0_97 = arith.constant 0 : index
    %c0_98 = arith.constant 0 : index
    %255 = vector.load %arg12[%c4_96, %c0_97, %c0_98] : memref<8x2x8xf32, #tpu.memory_space<vmem>>, vector<1x2x8xf32>
    %256 = vector.shape_cast %255 : vector<1x2x8xf32> to vector<2x8xf32>
    %257 = vector.shape_cast %254 : vector<2x8xf32> to vector<1x2x8xf32>
    tpu.vector_store %arg12[%c4_96, %c0_97, %c0_98], %257 {strides = array<i32>} : memref<8x2x8xf32, #tpu.memory_space<vmem>>, vector<1x2x8xf32>,
    %258 = vector.extract_strided_slice %207 {offsets = [0, 5, 0], sizes = [2, 1, 32], strides = [1, 1, 1]} : vector<2x8x32xf32> to vector<2x1x32xf32>
    %259 = vector.shape_cast %258 : vector<2x1x32xf32> to vector<2x32xf32>
    %c5_99 = arith.constant 5 : index
    %c0_100 = arith.constant 0 : index
    %c0_101 = arith.constant 0 : index
    %260 = vector.load %arg11[%c5_99, %c0_100, %c0_101] : memref<8x2x32xf32, #tpu.memory_space<vmem>>, vector<1x2x32xf32>
    %261 = vector.shape_cast %260 : vector<1x2x32xf32> to vector<2x32xf32>
    %262 = vector.shape_cast %259 : vector<2x32xf32> to vector<1x2x32xf32>
    tpu.vector_store %arg11[%c5_99, %c0_100, %c0_101], %262 {strides = array<i32>} : memref<8x2x32xf32, #tpu.memory_space<vmem>>, vector<1x2x32xf32>,
    %263 = vector.extract_strided_slice %198 {offsets = [0, 5, 0], sizes = [2, 1, 8], strides = [1, 1, 1]} : vector<2x8x8xf32> to vector<2x1x8xf32>
    %264 = vector.shape_cast %263 : vector<2x1x8xf32> to vector<2x8xf32>
    %c5_102 = arith.constant 5 : index
    %c0_103 = arith.constant 0 : index
    %c0_104 = arith.constant 0 : index
    %265 = vector.load %arg12[%c5_102, %c0_103, %c0_104] : memref<8x2x8xf32, #tpu.memory_space<vmem>>, vector<1x2x8xf32>
    %266 = vector.shape_cast %265 : vector<1x2x8xf32> to vector<2x8xf32>
    %267 = vector.shape_cast %264 : vector<2x8xf32> to vector<1x2x8xf32>
    tpu.vector_store %arg12[%c5_102, %c0_103, %c0_104], %267 {strides = array<i32>} : memref<8x2x8xf32, #tpu.memory_space<vmem>>, vector<1x2x8xf32>,
    %268 = vector.extract_strided_slice %207 {offsets = [0, 6, 0], sizes = [2, 1, 32], strides = [1, 1, 1]} : vector<2x8x32xf32> to vector<2x1x32xf32>
    %269 = vector.shape_cast %268 : vector<2x1x32xf32> to vector<2x32xf32>
    %c6_105 = arith.constant 6 : index
    %c0_106 = arith.constant 0 : index
    %c0_107 = arith.constant 0 : index
    %270 = vector.load %arg11[%c6_105, %c0_106, %c0_107] : memref<8x2x32xf32, #tpu.memory_space<vmem>>, vector<1x2x32xf32>
    %271 = vector.shape_cast %270 : vector<1x2x32xf32> to vector<2x32xf32>
    %272 = vector.shape_cast %269 : vector<2x32xf32> to vector<1x2x32xf32>
    tpu.vector_store %arg11[%c6_105, %c0_106, %c0_107], %272 {strides = array<i32>} : memref<8x2x32xf32, #tpu.memory_space<vmem>>, vector<1x2x32xf32>,
    %273 = vector.extract_strided_slice %198 {offsets = [0, 6, 0], sizes = [2, 1, 8], strides = [1, 1, 1]} : vector<2x8x8xf32> to vector<2x1x8xf32>
    %274 = vector.shape_cast %273 : vector<2x1x8xf32> to vector<2x8xf32>
    %c6_108 = arith.constant 6 : index
    %c0_109 = arith.constant 0 : index
    %c0_110 = arith.constant 0 : index
    %275 = vector.load %arg12[%c6_108, %c0_109, %c0_110] : memref<8x2x8xf32, #tpu.memory_space<vmem>>, vector<1x2x8xf32>
    %276 = vector.shape_cast %275 : vector<1x2x8xf32> to vector<2x8xf32>
    %277 = vector.shape_cast %274 : vector<2x8xf32> to vector<1x2x8xf32>
    tpu.vector_store %arg12[%c6_108, %c0_109, %c0_110], %277 {strides = array<i32>} : memref<8x2x8xf32, #tpu.memory_space<vmem>>, vector<1x2x8xf32>,
    %278 = vector.extract_strided_slice %207 {offsets = [0, 7, 0], sizes = [2, 1, 32], strides = [1, 1, 1]} : vector<2x8x32xf32> to vector<2x1x32xf32>
    %279 = vector.shape_cast %278 : vector<2x1x32xf32> to vector<2x32xf32>
    %c7_111 = arith.constant 7 : index
    %c0_112 = arith.constant 0 : index
    %c0_113 = arith.constant 0 : index
    %280 = vector.load %arg11[%c7_111, %c0_112, %c0_113] : memref<8x2x32xf32, #tpu.memory_space<vmem>>, vector<1x2x32xf32>
    %281 = vector.shape_cast %280 : vector<1x2x32xf32> to vector<2x32xf32>
    %282 = vector.shape_cast %279 : vector<2x32xf32> to vector<1x2x32xf32>
    tpu.vector_store %arg11[%c7_111, %c0_112, %c0_113], %282 {strides = array<i32>} : memref<8x2x32xf32, #tpu.memory_space<vmem>>, vector<1x2x32xf32>,
    %283 = vector.extract_strided_slice %198 {offsets = [0, 7, 0], sizes = [2, 1, 8], strides = [1, 1, 1]} : vector<2x8x8xf32> to vector<2x1x8xf32>
    %284 = vector.shape_cast %283 : vector<2x1x8xf32> to vector<2x8xf32>
    %c7_114 = arith.constant 7 : index
    %c0_115 = arith.constant 0 : index
    %c0_116 = arith.constant 0 : index
    %285 = vector.load %arg12[%c7_114, %c0_115, %c0_116] : memref<8x2x8xf32, #tpu.memory_space<vmem>>, vector<1x2x8xf32>
    %286 = vector.shape_cast %285 : vector<1x2x8xf32> to vector<2x8xf32>
    %287 = vector.shape_cast %284 : vector<2x8xf32> to vector<1x2x8xf32>
    tpu.vector_store %arg12[%c7_114, %c0_115, %c0_116], %287 {strides = array<i32>} : memref<8x2x8xf32, #tpu.memory_space<vmem>>, vector<1x2x8xf32>,
    return
  }
}

</mosaic_0001>

<bundles_post_ra>
// kernel: tpu_custom_call.1
= control target key start
LH: loop header
LB: loop body
LE: loop exit
PB: predicated region body
PF: predicated region fallthrough
CT: control target
= control target key end

     0   :  { %20 = vsyncpa [#allocation4], 0  ;;  %s3263_s0 = inlined_call_operand.hbm [shape: f32[16,32], index: 0, kind: input, shape index: {}]   ;;  %s3264_s1 = inlined_call_operand.hbm [shape: f32[2,8,32], index: 1, kind: input, shape index: {}]   ;;  %s3265_s2 = inlined_call_operand.vmem [shape: f32[2,8], index: 2, kind: input, shape index: {}]   ;;  %s3266_s3 = inlined_call_operand.vmem [shape: f32[2,32], index: 3, kind: input, shape index: {}]   ;;  %s3267_s4 = inlined_call_operand.vmem [shape: f32[2,32], index: 4, kind: input, shape index: {}]   ;;  %s3268_s5 = inlined_call_operand.hbm [shape: f32[32,128], index: 5, kind: input, shape index: {}]   ;;  %s3269_s6 = inlined_call_operand.hbm [shape: f32[32,128], index: 6, kind: input, shape index: {}]   ;;  %s3270_s7 = inlined_call_operand.vmem [shape: f32[1,128], index: 7, kind: input, shape index: {}]   ;;  %s3271_s8 = inlined_call_operand.hbm [shape: f32[32,32], index: 8, kind: input, shape index: {}]   ;;  %s3272_s9 = inlined_call_operand.hbm [shape: f32[32,32], index: 9, kind: input, shape index: {}]   ;;  %s3273_s10 = inlined_call_operand.hbm [shape: f32[32,32], index: 10, kind: input, shape index: {}]   ;;  %s3274_s11 = inlined_call_operand.hbm [shape: f32[8,2,32], index: 11, kind: output, shape index: {0}]   ;;  %s3275_s12 = inlined_call_operand.hbm [shape: f32[8,2,8], index: 12, kind: output, shape index: {1}]   ;;  %s3276_s13 = inlined_call_operand.hbm [shape: f32[2,32], index: 13, kind: output, shape index: {2}]   ;;  %s3277_s14 = inlined_call_operand.hbm [shape: f32[2,32], index: 14, kind: output, shape index: {3}]  }
   0x1   :  { %21 = vsyncpa [#allocation7], 0 }
   0x2   :  { %22 = vsyncpa [#allocation10], 0 }
   0x3   :  { %23 = vsyncpa [#allocation13], 0 }
   0x4   :  { %24 = vsyncpa [#allocation5], 0 }
   0x5   :  { %25 = vsyncpa [#allocation17], 0 }
   0x6   :  { %26 = vsyncpa [#allocation20], 0  ;;  %s2765_s29 = smov [#allocation6]   ;;  %s2766_s15 = smov [#allocation9]  }
   0x7   :  { %s44_s30 = sshll.u32 %s2765_s29, 4  ;;  %s74_s16 = sshll.u32 %s2766_s15, 4  ;;  %s45_s30 = int_to_ptr.vmem [resolvable:$true] %s44_s30  ;;  %s75_s16 = int_to_ptr.vmem [resolvable:$true] %s74_s16 }
   0x8   :  { %s2539_s17 = scalar_lea.vmem %s45_s30, 256  ;;  %p2544_p1 = scmp.lt.s32.totalorder %s45_s30, %s45_s30 }
   0x9   :  { %p2540_p0 = scmp.ne.s32.totalorder %s45_s30, %s2539_s17  ;;  %p2545_p2 = scmp.lt.s32.totalorder %s2539_s17, %s2539_s17 }
   0xb   :  { %p2546_p3 = por %p2545_p2, %p2544_p1 }
   0xd   :  { %p2547_p4 = pnand %p2546_p3, %p2540_p0 }
   0xf   :  { %2550 = shalt.err (!%p2547_p4)
}
  0x10   :  { %s2767_s18 = smov 128   ;;  %s2768_s19 = smov 8  }
  0x11   :  { %50 = dma.hbm_to_vmem [thread:$0]  %s3264_s1, 256, %s45_s30, [#allocation7], %s2767_s18, %s2767_s18, %s2768_s19  }
  0x12   :  { %s2559_s22 = scalar_lea.vmem %s75_s16, 512  ;;  %p2564_p6 = scmp.lt.s32.totalorder %s75_s16, %s75_s16 }
  0x13   :  { %p2560_p5 = scmp.ne.s32.totalorder %s75_s16, %s2559_s22  ;;  %p2565_p7 = scmp.lt.s32.totalorder %s2559_s22, %s2559_s22 }
  0x15   :  { %p2566_p8 = por %p2565_p7, %p2564_p6 }
  0x17   :  { %p2567_p9 = pnand %p2566_p8, %p2560_p5 }
  0x19   :  { %2570 = shalt.err (!%p2567_p9)
}
  0x1a   :  { %80 = dma.hbm_to_vmem [thread:$0]  %s3269_s6, 512, %s75_s16, [#allocation10], %s2767_s18, %s2767_s18, %s2768_s19  }
  0x1b   :  { %s2769_s25 = smov [#allocation12]   ;;  %s2770_s27 = smov [#allocation3]  }
  0x1c   :  { %s100_s26 = sshll.u32 %s2769_s25, 4  ;;  %s32_s28 = sshll.u32 %s2770_s27, 4  ;;  %s101_s26 = int_to_ptr.vmem [resolvable:$true] %s100_s26  ;;  %s33_s28 = int_to_ptr.vmem [resolvable:$true] %s32_s28 }
  0x1d   :  { %s2579_s1 = scalar_lea.vmem %s101_s26, 512  ;;  %p2584_p11 = scmp.lt.s32.totalorder %s101_s26, %s101_s26 }
  0x1e   :  { %p2580_p10 = scmp.ne.s32.totalorder %s101_s26, %s2579_s1  ;;  %p2585_p12 = scmp.lt.s32.totalorder %s2579_s1, %s2579_s1 }
  0x20   :  { %p2586_p13 = por %p2585_p12, %p2584_p11 }
  0x22   :  { %p2587_p0 = pnand %p2586_p13, %p2580_p10 }
  0x24   :  { %2590 = shalt.err (!%p2587_p0)
}
  0x25   :  { %106 = dma.hbm_to_vmem [thread:$0]  %s3272_s9, 512, %s101_s26, [#allocation13], %s2767_s18, %s2767_s18, %s2768_s19  }
  0x26   :  { %s2599_s6 = scalar_lea.vmem %s33_s28, 256  ;;  %p2604_p2 = scmp.lt.s32.totalorder %s33_s28, %s33_s28 }
  0x27   :  { %p2600_p1 = scmp.ne.s32.totalorder %s33_s28, %s2599_s6  ;;  %p2605_p3 = scmp.lt.s32.totalorder %s2599_s6, %s2599_s6 }
  0x29   :  { %p2606_p4 = por %p2605_p3, %p2604_p2 }
  0x2b   :  { %p2607_p5 = pnand %p2606_p4, %p2600_p1 }
  0x2d   :  { %2610 = shalt.err (!%p2607_p5)
}
  0x2e   :  { %38 = dma.hbm_to_vmem [thread:$0]  %s3263_s0, 256, %s33_s28, [#allocation4], %s2767_s18, %s2767_s18, %s2768_s19  }
  0x2f   :  { %s2771_s17 = smov [#allocation8]   ;;  %s2772_s21 = smov [#allocation11]  }
  0x30   :  { %s62_s20 = sshll.u32 %s2771_s17, 4  ;;  %s88_s22 = sshll.u32 %s2772_s21, 4  ;;  %s63_s20 = int_to_ptr.vmem [resolvable:$true] %s62_s20  ;;  %s89_s22 = int_to_ptr.vmem [resolvable:$true] %s88_s22 }
  0x31   :  { %s2619_s9 = scalar_lea.vmem %s63_s20, 512  ;;  %p2624_p7 = scmp.lt.s32.totalorder %s63_s20, %s63_s20 }
  0x32   :  { %p2620_p6 = scmp.ne.s32.totalorder %s63_s20, %s2619_s9  ;;  %p2625_p8 = scmp.lt.s32.totalorder %s2619_s9, %s2619_s9 }
  0x34   :  { %p2626_p9 = por %p2625_p8, %p2624_p7 }
  0x36   :  { %p2627_p10 = pnand %p2626_p9, %p2620_p6 }
  0x38   :  { %2630 = shalt.err (!%p2627_p10)
}
  0x39   :  { %68 = dma.hbm_to_vmem [thread:$0]  %s3268_s5, 512, %s63_s20, [#allocation7], %s2767_s18, %s2767_s18, %s2768_s19  }
  0x3a   :  { %s2639_s0 = scalar_lea.vmem %s89_s22, 512  ;;  %p2644_p12 = scmp.lt.s32.totalorder %s89_s22, %s89_s22 }
  0x3b   :  { %p2640_p11 = scmp.ne.s32.totalorder %s89_s22, %s2639_s0  ;;  %p2645_p13 = scmp.lt.s32.totalorder %s2639_s0, %s2639_s0 }
  0x3d   :  { %p2646_p0 = por %p2645_p13, %p2644_p12 }
  0x3f   :  { %p2647_p1 = pnand %p2646_p0, %p2640_p11 }
  0x41   :  { %2650 = shalt.err (!%p2647_p1)
}
  0x42   :  { %94 = dma.hbm_to_vmem [thread:$0]  %s3271_s8, 512, %s89_s22, [#allocation10], %s2767_s18, %s2767_s18, %s2768_s19  }
  0x43   :  { %s2773_s27 = smov [#allocation14]  }
  0x44   :  { %s112_s28 = sshll.u32 %s2773_s27, 4  ;;  %s113_s28 = int_to_ptr.vmem [resolvable:$true] %s112_s28 }
  0x45   :  { %s2659_s1 = scalar_lea.vmem %s113_s28, 512  ;;  %p2664_p3 = scmp.lt.s32.totalorder %s113_s28, %s113_s28 }
  0x46   :  { %p2660_p2 = scmp.ne.s32.totalorder %s113_s28, %s2659_s1  ;;  %p2665_p4 = scmp.lt.s32.totalorder %s2659_s1, %s2659_s1 }
  0x48   :  { %p2666_p5 = por %p2665_p4, %p2664_p3 }
  0x4a   :  { %p2667_p6 = pnand %p2666_p5, %p2660_p2 }
  0x4c   :  { %2670 = shalt.err (!%p2667_p6)
}
  0x4d   :  { %118 = dma.hbm_to_vmem [thread:$0]  %s3273_s10, 512, %s113_s28, [#allocation13], %s2767_s18, %s2767_s18, %s2768_s19  }
  0x4e   :  { %2751 = dma.done.wait [#allocation4], 256  }
  0x4f   :  { %2752 = vsyncadd [#allocation4], 4294967040 }
  0x50   :  { %2753 = dma.done.wait [#allocation7], 768  }
  0x51   :  { %2754 = vsyncadd [#allocation7], 4294966528 }
  0x52   :  { %2755 = dma.done.wait [#allocation10], 1024  }
  0x53   :  { %2756 = vsyncadd [#allocation10], 4294966272 }
  0x54   :  { %2757 = dma.done.wait [#allocation13], 1024  }
  0x55   :  { %2758 = vsyncadd [#allocation13], 4294966272  ;;  %v2774_v0 = vmov 0.0   ;;  %vm2775_vm0 = vmmov 0   ;;  %v145_v1 = vld [vmem:[#allocation8 + $0x18] sm:$0xff]  ;;  %v144_v2 = vld [vmem:[#allocation8 + $0x10] sm:$0xff] }
  0x56   :  { %2294 = vmatprep.subr.mxu1 %v2774_v0  ;;  %2302 = vmatprep.mubr.msk.f32.mxu1 %vm2775_vm0, %v2774_v0  ;;  %v2905_v3 = vld [vmem:[#allocation9 + $0x18] sm:$0xff]  ;;  %v2908_v4 = vld [vmem:[#allocation9 + $0x10] sm:$0xff]  ;;  %v143_v5 = vld [vmem:[#allocation8 + $0x8] sm:$0xff]  ;;  %vm3280_vm1 = vcmask 261120   ;;  %s2776_s19 = smov 64   ;;  %vm3279_vm2 = vcmask 253952  }
  0x57   :  { %2283 = vmatprep.subr.mxu0 %v145_v1  ;;  %2295 = vmatpush3.msra.mxu1 %v2905_v3  ;;  %v140_v6 = vld [vmem:[#allocation3] sm:$0xff]  ;;  %v2912_v7 = vld [vmem:[#allocation9 + $0x8] sm:$0xff]  ;;  %v239_v11 = vld [vmem:[%s3266_s3] sm:$0x3]  ;;  %vm1690_vm3 = vcmask 64512   ;;  %vm3278_vm4 = vcmask 261126  }
  0x58   :  { %2284 = vmatpush3.msra.mxu0 %v145_v1  ;;  %2296 = vmatprep.subr.mxu1 %v2774_v0  ;;  %v142_v8 = vld [vmem:[#allocation8] sm:$0xff]  ;;  %v141_v10 = vld [vmem:[#allocation3 + $0x8] sm:$0xff]  ;;  %v2179_v12 = vld [vmem:[%s3270_s7] ss:$0 sm:$0xff]  ;;  %s2777_s7 = smov 32   ;;  %vm2112_vm5 = vcmask 64519  }
  0x59   :  { %2285 = vmatprep.subr.mxu0 %v144_v2  ;;  %2297 = vmatpush3.msra.mxu1 %v2908_v4  ;;  %v2916_v9 = vld [vmem:[#allocation9] sm:$0xff]  ;;  %v240_v21 = vld [vmem:[%s3267_s4] sm:$0x3]  ;;  %vm2028_vm6 = vcmask 1041409   ;;  %vm2038_vm7 = vcmask 1042434   ;;  %vm2049_vm8 = vcmask 1043459  }
  0x5a   :  { %2286 = vmatpush3.msra.mxu0 %v144_v2  ;;  %2298 = vmatprep.subr.mxu1 %v2774_v0  ;;  %vm2036_vm9 = vcmask 58368   ;;  %vm2047_vm10 = vcmask 59393   ;;  %vm2060_vm11 = vcmask 1044484   ;;  %vm2114_vm12 = vcmask 57344   ;;  %s2780_s16 = smov [#allocation16]  }
  0x5b   :  { %2287 = vmatprep.subr.mxu0 %v143_v5  ;;  %2291 = vmatprep.mubr.msk.f32.mxu0 %vm3280_vm1, %v140_v6  ;;  %vm2058_vm13 = vcmask 60418   ;;  %vm2071_vm14 = vcmask 1045509   ;;  %vm2082_vm15 = vcmask 1046534   ;;  %s2133_s17 = sshll.u32 %s2780_s16, 4  ;;  %s2134_s17 = int_to_ptr.vmem [resolvable:$true] %s2133_s17 }
  0x5c   :  { %2288 = vmatpush3.msra.mxu0 %v143_v5  ;;  %2299 = vmatpush3.msra.mxu1 %v2912_v7  ;;  %s2671_s20 = scalar_lea.vmem %s2134_s17, 256  ;;  %p2676_p8 = scmp.lt.s32.totalorder %s2134_s17, %s2134_s17 }
  0x5d   :  { %2289 = vmatprep.subr.mxu0 %v142_v8  ;;  %2300 = vmatprep.subr.mxu1 %v2774_v0  ;;  %p2672_p7 = scmp.ne.s32.totalorder %s2134_s17, %s2671_s20  ;;  %p2677_p9 = scmp.lt.s32.totalorder %s2671_s20, %s2671_s20 }
  0x5e   :  { %2290 = vmatpush3.msra.mxu0 %v142_v8  ;;  %2301 = vmatpush3.msra.mxu1 %v2916_v9 }
  0x5f   :  { %2292 = vmatmul.mubr.msk.f32.vlgmr.msra.gmra.mxu0 %vm3280_vm1, %v141_v10  ;;  %2303 = vmatmul.mubr.msk.f32.vlgmr.msra.gmra.mxu1 %vm3280_vm1, %v239_v11  ;;  %p2678_p10 = por %p2677_p9, %p2676_p8 }
  0x60   :  { %2305 = vmatprep.subr.mxu0 %v2774_v0  ;;  %2313 = vmatprep.mubr.msk.f32.mxu0 %vm2775_vm0, %v2774_v0 }
  0x61   :  { %2306 = vmatpush3.msra.mxu0 %v2905_v3  ;;  %2316 = vmatprep.subr.mxu1 %v2774_v0  ;;  %p2679_p11 = pnand %p2678_p10, %p2672_p7 }
  0x62   :  { %2307 = vmatprep.subr.mxu0 %v2774_v0  ;;  %2317 = vmatpush3.msra.mxu1 %v2905_v3 }
  0x63   :  { %2308 = vmatpush3.msra.mxu0 %v2908_v4  ;;  %2318 = vmatprep.subr.mxu1 %v2774_v0 }
  0x64   :  { %2309 = vmatprep.subr.mxu0 %v2774_v0  ;;  %2319 = vmatpush3.msra.mxu1 %v2908_v4 }
  0x65   :  { %2310 = vmatpush3.msra.mxu0 %v2912_v7  ;;  %2320 = vmatprep.subr.mxu1 %v2774_v0 }
  0x66   :  { %2311 = vmatprep.subr.mxu0 %v2774_v0  ;;  %2321 = vmatpush3.msra.mxu1 %v2912_v7 }
  0x67   :  { %2312 = vmatpush3.msra.mxu0 %v2916_v9  ;;  %2322 = vmatprep.subr.mxu1 %v2774_v0 }
  0x68   :  { %2323 = vmatpush3.msra.mxu1 %v2916_v9  ;;  %2324 = vmatprep.mubr.msk.f32.mxu1 %vm2775_vm0, %v2774_v0 }
  0x69   :  { %2327 = vmatprep.subr.mxu0 %v2774_v0  ;;  %2338 = vmatprep.subr.mxu1 %v2774_v0 }
 0x11f   :  { %v2293_v13 = vpop.f32.mrf.mxu0  ;;  %v310_v14 = vpop.f32.mrf.mxu1 }
 0x120   :  { %v2951_v15 = vadd.f32 %v2293_v13, %v2179_v12 }
 0x121   :  { %v226_v16 = vpop.f32.mrf.mxu0  ;;  %v2304_v17 = vpop.f32.mrf.mxu1 }
 0x122   :  { %v2953_v18 = vadd.f32 %v2179_v12, %v226_v16 }
 0x124   :  { %v314_v19 = vadd.f32 %v310_v14, %v2953_v18 }
 0x126   :  { %2455 = vtanh.f32 %v314_v19  ;;  %v2183_v22 = vmul.f32 -1.442695, %v314_v19 }
 0x128   :  { %2457 = vpow2.f32 %v2183_v22 }
 0x133   :  { %v2456_v20 = vpop.eup %2455 }
 0x134   :  { %328 = vrot.lane.b32.xlu0 %v2456_v20, %s2776_s19 }
 0x135   :  { %v2458_v23 = vpop.eup %2457 }
 0x136   :  { %v318_v24 = vadd.f32 1.0, %v2458_v23 }
 0x138   :  { %323 = vrot.lane.b32.xlu0 %v240_v21, %s2777_s7  ;;  %2459 = vrcp.f32 %v318_v24 }
 0x145   :  { %v2460_v25 = vpop.eup %2459 }
 0x1a6   :  { %v329_v26 = vpop.permute.xlu0 %328 }
 0x1a7   :  { %v331_v27 = vmul.f32 %v2460_v25, %v329_v26 }
 0x1a9   :  { %333 = vrot.lane.b32.xlu1 %v331_v27, %s2777_s7 }
 0x1aa   :  { %v324_v28 = vpop.permute.xlu0 %323 }
 0x1ab   :  { %v326_v29 = vmul.f32 %v2460_v25, %v324_v28 }
 0x21b   :  { %v334_v30 = vpop.permute.xlu1 %333 }
 0x21c   :  { %v336_v31 = vadd.f32 %v334_v30, %v326_v29 }
 0x21e   :  { %2461 = vtanh.f32 %v336_v31  ;;  %v469_v47 = vrot.slane %v336_v31, 6 }
 0x22b   :  { %v2462_v32 = vpop.eup %2461 }
 0x22c   :  { %339 = vrot.lane.b32.xlu1 %v2462_v32, %s2776_s19 }
 0x29e   :  { %v340_v33 = vpop.permute.xlu1 %339 }
 0x29f   :  { %v2963_v34 = vmul.f32 %v2460_v25, %v340_v33 }
 0x2a1   :  { %383 = vrot.lane.b32.xlu0 %v2963_v34, %s2777_s7 }
 0x313   :  { %v384_v35 = vpop.permute.xlu0 %383 }
 0x314   :  { %2314 = vmatmul.mubr.msk.f32.vlgmr.msra.gmra.mxu0 %vm3280_vm1, %v384_v35 }
 0x315   :  { %2328 = vmatpush3.msra.mxu0 %v2905_v3  ;;  %2335 = vmatprep.mubr.msk.f32.mxu0 %vm2775_vm0, %v2774_v0 }
 0x316   :  { %2329 = vmatprep.subr.mxu0 %v2774_v0 }
 0x317   :  { %2330 = vmatpush3.msra.mxu0 %v2908_v4 }
 0x318   :  { %2331 = vmatprep.subr.mxu0 %v2774_v0 }
 0x319   :  { %2332 = vmatpush3.msra.mxu0 %v2912_v7 }
 0x31a   :  { %2333 = vmatprep.subr.mxu0 %v2774_v0 }
 0x31b   :  { %2334 = vmatpush3.msra.mxu0 %v2916_v9 }
 0x31c   :  { %2349 = vmatprep.subr.mxu0 %v2774_v0 }
 0x3d4   :  { %v453_v36 = vpop.f32.mrf.mxu0 }
 0x3d5   :  { %v458_v37 = vrot.slane %v453_v36, 6 }
 0x3d6   :  { %v2315_v38 = vpop.f32.mrf.mxu0 }
 0x3d7   :  { %v460_v39 = vadd.f32 %v458_v37, %v2953_v18 }
 0x3d9   :  { %2463 = vtanh.f32 %v460_v39  ;;  %v2185_v41 = vmul.f32 -1.442695, %v460_v39 }
 0x3db   :  { %2465 = vpow2.f32 %v2185_v41 }
 0x3e6   :  { %v2464_v40 = vpop.eup %2463 }
 0x3e7   :  { %473 = vrot.lane.b32.xlu1 %v2464_v40, %s2776_s19 }
 0x3e8   :  { %v2466_v42 = vpop.eup %2465 }
 0x3e9   :  { %v464_v43 = vadd.f32 1.0, %v2466_v42 }
 0x3eb   :  { %2467 = vrcp.f32 %v464_v43 }
 0x3f8   :  { %v2468_v44 = vpop.eup %2467 }
 0x3f9   :  { %v471_v48 = vmul.f32 %v2468_v44, %v469_v47 }
 0x459   :  { %v474_v45 = vpop.permute.xlu1 %473 }
 0x45a   :  { %v476_v46 = vmul.f32 %v2468_v44, %v474_v45 }
 0x45c   :  { %478 = vrot.lane.b32.xlu0 %v476_v46, %s2777_s7 }
 0x4ce   :  { %v479_v49 = vpop.permute.xlu0 %478 }
 0x4cf   :  { %v481_v50 = vadd.f32 %v479_v49, %v471_v48 }
 0x4d1   :  { %2469 = vtanh.f32 %v481_v50  ;;  %v616_v6 = vrot.slane %v481_v50, 6 }
 0x4de   :  { %v2470_v51 = vpop.eup %2469 }
 0x4df   :  { %484 = vrot.lane.b32.xlu1 %v2470_v51, %s2776_s19 }
 0x551   :  { %v485_v52 = vpop.permute.xlu1 %484 }
 0x552   :  { %v2982_v53 = vmul.f32 %v2468_v44, %v485_v52 }
 0x554   :  { %v529_v54 = vrot.slane %v2982_v53, 2 }
 0x556   :  { %530 = vrot.lane.b32.xlu0 %v529_v54, %s2777_s7 }
 0x5c8   :  { %v531_v55 = vpop.permute.xlu0 %530 }
 0x5c9   :  { %2325 = vmatmul.mubr.msk.f32.vlgmr.msra.gmra.mxu1 %vm3280_vm1, %v531_v55 }
 0x5ca   :  { %2339 = vmatpush3.msra.mxu1 %v2905_v3  ;;  %2346 = vmatprep.mubr.msk.f32.mxu1 %vm2775_vm0, %v2774_v0 }
 0x5cb   :  { %2340 = vmatprep.subr.mxu1 %v2774_v0 }
 0x5cc   :  { %2341 = vmatpush3.msra.mxu1 %v2908_v4 }
 0x5cd   :  { %2342 = vmatprep.subr.mxu1 %v2774_v0 }
 0x5ce   :  { %2343 = vmatpush3.msra.mxu1 %v2912_v7 }
 0x5cf   :  { %2344 = vmatprep.subr.mxu1 %v2774_v0 }
 0x5d0   :  { %2345 = vmatpush3.msra.mxu1 %v2916_v9 }
 0x5d1   :  { %2360 = vmatprep.subr.mxu1 %v2774_v0 }
 0x689   :  { %v600_v56 = vpop.f32.mrf.mxu1 }
 0x68a   :  { %v605_v57 = vrot.slane %v600_v56, 4 }
 0x68b   :  { %v2326_v58 = vpop.f32.mrf.mxu1 }
 0x68c   :  { %v607_v59 = vadd.f32 %v605_v57, %v2953_v18 }
 0x68e   :  { %2471 = vtanh.f32 %v607_v59  ;;  %v2187_v61 = vmul.f32 -1.442695, %v607_v59 }
 0x690   :  { %2473 = vpow2.f32 %v2187_v61 }
 0x69b   :  { %v2472_v60 = vpop.eup %2471 }
 0x69c   :  { %620 = vrot.lane.b32.xlu1 %v2472_v60, %s2776_s19 }
 0x69d   :  { %v2474_v62 = vpop.eup %2473 }
 0x69e   :  { %v611_v63 = vadd.f32 1.0, %v2474_v62 }
 0x6a0   :  { %2475 = vrcp.f32 %v611_v63 }
 0x6ad   :  { %v2476_v1 = vpop.eup %2475 }
 0x6ae   :  { %v618_v8 = vmul.f32 %v2476_v1, %v616_v6 }
 0x70e   :  { %v621_v2 = vpop.permute.xlu1 %620 }
 0x70f   :  { %v623_v5 = vmul.f32 %v2476_v1, %v621_v2 }
 0x711   :  { %625 = vrot.lane.b32.xlu0 %v623_v5, %s2777_s7 }
 0x783   :  { %v626_v10 = vpop.permute.xlu0 %625 }
 0x784   :  { %v628_v11 = vadd.f32 %v626_v10, %v618_v8 }
 0x786   :  { %2477 = vtanh.f32 %v628_v11  ;;  %v762_v30 = vrot.slane %v628_v11, 6 }
 0x793   :  { %v2478_v12 = vpop.eup %2477 }
 0x794   :  { %631 = vrot.lane.b32.xlu1 %v2478_v12, %s2776_s19 }
 0x806   :  { %v632_v13 = vpop.permute.xlu1 %631 }
 0x807   :  { %v3001_v14 = vmul.f32 %v2476_v1, %v632_v13 }
 0x809   :  { %v675_v16 = vrot.slane %v3001_v14, 4 }
 0x80b   :  { %676 = vrot.lane.b32.xlu0 %v675_v16, %s2777_s7 }
 0x87d   :  { %v677_v17 = vpop.permute.xlu0 %676 }
 0x87e   :  { %2336 = vmatmul.mubr.msk.f32.vlgmr.msra.gmra.mxu0 %vm3280_vm1, %v677_v17 }
 0x87f   :  { %2350 = vmatpush3.msra.mxu0 %v2905_v3  ;;  %2357 = vmatprep.mubr.msk.f32.mxu0 %vm2775_vm0, %v2774_v0 }
 0x880   :  { %2351 = vmatprep.subr.mxu0 %v2774_v0 }
 0x881   :  { %2352 = vmatpush3.msra.mxu0 %v2908_v4 }
 0x882   :  { %2353 = vmatprep.subr.mxu0 %v2774_v0 }
 0x883   :  { %2354 = vmatpush3.msra.mxu0 %v2912_v7 }
 0x884   :  { %2355 = vmatprep.subr.mxu0 %v2774_v0 }
 0x885   :  { %2356 = vmatpush3.msra.mxu0 %v2916_v9 }
 0x886   :  { %2371 = vmatprep.subr.mxu0 %v2774_v0 }
 0x93e   :  { %v746_v19 = vpop.f32.mrf.mxu0 }
 0x93f   :  { %v751_v20 = vrot.slane %v746_v19, 2 }
 0x940   :  { %v2337_v21 = vpop.f32.mrf.mxu0 }
 0x941   :  { %v753_v22 = vadd.f32 %v751_v20, %v2953_v18 }
 0x943   :  { %2479 = vtanh.f32 %v753_v22  ;;  %v2189_v24 = vmul.f32 -1.442695, %v753_v22 }
 0x945   :  { %2481 = vpow2.f32 %v2189_v24 }
 0x950   :  { %v2480_v23 = vpop.eup %2479 }
 0x951   :  { %766 = vrot.lane.b32.xlu1 %v2480_v23, %s2776_s19 }
 0x952   :  { %v2482_v25 = vpop.eup %2481 }
 0x953   :  { %v757_v26 = vadd.f32 1.0, %v2482_v25 }
 0x955   :  { %2483 = vrcp.f32 %v757_v26 }
 0x962   :  { %v2484_v27 = vpop.eup %2483 }
 0x963   :  { %v764_v31 = vmul.f32 %v2484_v27, %v762_v30 }
 0x9c3   :  { %v767_v28 = vpop.permute.xlu1 %766 }
 0x9c4   :  { %v769_v29 = vmul.f32 %v2484_v27, %v767_v28 }
 0x9c6   :  { %771 = vrot.lane.b32.xlu0 %v769_v29, %s2777_s7 }
 0xa38   :  { %v772_v32 = vpop.permute.xlu0 %771 }
 0xa39   :  { %v774_v33 = vadd.f32 %v772_v32, %v764_v31 }
 0xa3b   :  { %2485 = vtanh.f32 %v774_v33  ;;  %v907_v49 = vrot.slane %v774_v33, 6 }
 0xa48   :  { %v2486_v18 = vpop.eup %2485 }
 0xa49   :  { %777 = vrot.lane.b32.xlu1 %v2486_v18, %s2776_s19 }
 0xabb   :  { %v778_v35 = vpop.permute.xlu1 %777 }
 0xabc   :  { %v3020_v36 = vmul.f32 %v2484_v27, %v778_v35 }
 0xabe   :  { %v823_v37 = vrot.slane %v3020_v36, 6 }
 0xac0   :  { %824 = vrot.lane.b32.xlu0 %v823_v37, %s2777_s7 }
 0xb32   :  { %v825_v38 = vpop.permute.xlu0 %824 }
 0xb33   :  { %2347 = vmatmul.mubr.msk.f32.vlgmr.msra.gmra.mxu1 %vm3280_vm1, %v825_v38 }
 0xb34   :  { %2361 = vmatpush3.msra.mxu1 %v2905_v3  ;;  %2368 = vmatprep.mubr.msk.f32.mxu1 %vm2775_vm0, %v2774_v0 }
 0xb35   :  { %2362 = vmatprep.subr.mxu1 %v2774_v0 }
 0xb36   :  { %2363 = vmatpush3.msra.mxu1 %v2908_v4 }
 0xb37   :  { %2364 = vmatprep.subr.mxu1 %v2774_v0 }
 0xb38   :  { %2365 = vmatpush3.msra.mxu1 %v2912_v7 }
 0xb39   :  { %2366 = vmatprep.subr.mxu1 %v2774_v0 }
 0xb3a   :  { %2367 = vmatpush3.msra.mxu1 %v2916_v9 }
 0xbf3   :  { %v894_v39 = vpop.f32.mrf.mxu1 }
 0xbf4   :  { %v898_v40 = vadd.f32 %v894_v39, %v2951_v15 }
 0xbf5   :  { %v2348_v41 = vpop.f32.mrf.mxu1 }
 0xbf6   :  { %2487 = vtanh.f32 %v898_v40  ;;  %v2191_v43 = vmul.f32 -1.442695, %v898_v40 }
 0xbf8   :  { %2489 = vpow2.f32 %v2191_v43 }
 0xc03   :  { %v2488_v42 = vpop.eup %2487 }
 0xc04   :  { %911 = vrot.lane.b32.xlu1 %v2488_v42, %s2776_s19 }
 0xc05   :  { %v2490_v44 = vpop.eup %2489 }
 0xc06   :  { %v902_v45 = vadd.f32 1.0, %v2490_v44 }
 0xc08   :  { %2491 = vrcp.f32 %v902_v45 }
 0xc15   :  { %v2492_v46 = vpop.eup %2491 }
 0xc16   :  { %v909_v50 = vmul.f32 %v2492_v46, %v907_v49  ;;  %v347_v49 = vlaneseq }
 0xc76   :  { %v912_v47 = vpop.permute.xlu1 %911 }
 0xc77   :  { %v914_v48 = vmul.f32 %v2492_v46, %v912_v47  ;;  %v2778_v47 = vmov 1966171168  }
 0xc79   :  { %916 = vrot.lane.b32.xlu0 %v914_v48, %s2777_s7  ;;  %v345_v48 = vunpack.c.l.s4 %v2778_v47 }
 0xceb   :  { %v917_v51 = vpop.permute.xlu0 %916 }
 0xcec   :  { %v919_v52 = vadd.f32 %v917_v51, %v909_v50  ;;  %v346_v50 = vunpack.c.0.s8 %v345_v48  ;;  %v348_v51 = vshrl.u32 %v347_v49, 7 }
 0xcee   :  { %2493 = vtanh.f32 %v919_v52 }
 0xcfb   :  { %v2494_v54 = vpop.eup %2493 }
 0xcfc   :  { %922 = vrot.lane.b32.xlu1 %v2494_v54, %s2776_s19 }
 0xd6e   :  { %v923_v55 = vpop.permute.xlu1 %922 }
 0xd6f   :  { %v3038_v56 = vmul.f32 %v2492_v46, %v923_v55 }
 0xd71   :  { %965 = vrot.lane.b32.xlu0 %v3038_v56, %s2777_s7 }
 0xde3   :  { %v966_v57 = vpop.permute.xlu0 %965 }
 0xde4   :  { %2358 = vmatmul.mubr.msk.f32.vlgmr.msra.gmra.mxu0 %vm3280_vm1, %v966_v57 }
 0xde5   :  { %2372 = vmatpush3.msra.mxu0 %v2905_v3  ;;  %2379 = vmatprep.mubr.msk.f32.mxu0 %vm2775_vm0, %v2774_v0 }
 0xde6   :  { %2373 = vmatprep.subr.mxu0 %v2774_v0 }
 0xde7   :  { %2374 = vmatpush3.msra.mxu0 %v2908_v4 }
 0xde8   :  { %2375 = vmatprep.subr.mxu0 %v2774_v0 }
 0xde9   :  { %2376 = vmatpush3.msra.mxu0 %v2912_v7 }
 0xdea   :  { %2377 = vmatprep.subr.mxu0 %v2774_v0 }
 0xdeb   :  { %2378 = vmatpush3.msra.mxu0 %v2916_v9  ;;  %v1051_v9 = vrot.slane %v919_v52, 6  ;;  %v3075_v52 = vsub.s32 %v346_v50, %v348_v51 }
 0xdec   :  { %2393 = vmatprep.subr.mxu0 %v2774_v0 }
 0xded   :  { %v350_v54 = vrot.slane %v2963_v34, %v3075_v52 }
 0xea4   :  { %v1035_v58 = vpop.f32.mrf.mxu0 }
 0xea5   :  { %v1040_v59 = vrot.slane %v1035_v58, 6  ;;  %v358_v58 = vrot.slane %v350_v54, %v3075_v52 }
 0xea6   :  { %v2359_v3 = vpop.f32.mrf.mxu0 }
 0xea7   :  { %v1042_v60 = vadd.f32 %v1040_v59, %v2951_v15 }
 0xea9   :  { %2495 = vtanh.f32 %v1042_v60  ;;  %v2193_v4 = vmul.f32 -1.442695, %v1042_v60  ;;  %v3086_v60 = vsub.s32 0, %v348_v51 }
 0xeab   :  { %2497 = vpow2.f32 %v2193_v4  ;;  %v369_v4 = vrot.slane %v358_v58, %v3086_v60 }
 0xeb6   :  { %v2496_v61 = vpop.eup %2495 }
 0xeb7   :  { %1055 = vrot.lane.b32.xlu1 %v2496_v61, %s2776_s19  ;;  %v933_v61 = vrot.slane %v3038_v56, %v3075_v52 }
 0xeb8   :  { %v2498_v62 = vpop.eup %2497 }
 0xeb9   :  { %v1046_v63 = vadd.f32 1.0, %v2498_v62  ;;  %v941_v62 = vrot.slane %v933_v61, %v3075_v52 }
 0xebb   :  { %2499 = vrcp.f32 %v1046_v63 }
 0xec8   :  { %v2500_v7 = vpop.eup %2499 }
 0xec9   :  { %v1053_v5 = vmul.f32 %v2500_v7, %v1051_v9 }
 0xf29   :  { %v1056_v1 = vpop.permute.xlu1 %1055 }
 0xf2a   :  { %v1058_v2 = vmul.f32 %v2500_v7, %v1056_v1  ;;  %v351_v1 = vcombine.high %v350_v54, %v350_v54 }
 0xf2c   :  { %1060 = vrot.lane.b32.xlu0 %v1058_v2, %s2777_s7  ;;  %v952_v2 = vrot.slane %v941_v62, %v3086_v60 }
 0xf9e   :  { %v1061_v6 = vpop.permute.xlu0 %1060 }
 0xf9f   :  { %v1063_v8 = vadd.f32 %v1061_v6, %v1053_v5  ;;  %v365_v6 = vrot.slane %v351_v1, %v3075_v52  ;;  %v1418_v1 = vld [vmem:[#allocation11 + $0x8] sm:$0xff] }
 0xfa1   :  { %2501 = vtanh.f32 %v1063_v8  ;;  %v1198_v29 = vrot.slane %v1063_v8, 6  ;;  %v934_v8 = vcombine.high %v933_v61, %v933_v61 }
 0xfae   :  { %v2502_v10 = vpop.eup %2501 }
 0xfaf   :  { %1066 = vrot.lane.b32.xlu1 %v2502_v10, %s2776_s19  ;;  %v373_v10 = vrot.slane %v365_v6, %v3086_v60 }
0x1021   :  { %v1067_v11 = vpop.permute.xlu1 %1066 }
0x1022   :  { %v3057_v12 = vmul.f32 %v2500_v7, %v1067_v11 }
0x1024   :  { %v1111_v13 = vrot.slane %v3057_v12, 2 }
0x1026   :  { %1112 = vrot.lane.b32.xlu0 %v1111_v13, %s2777_s7 }
0x1098   :  { %v1113_v16 = vpop.permute.xlu0 %1112 }
0x1099   :  { %2369 = vmatmul.mubr.msk.f32.vlgmr.msra.gmra.mxu1 %vm3280_vm1, %v1113_v16 }
0x1159   :  { %v1182_v17 = vpop.f32.mrf.mxu1 }
0x115a   :  { %v1187_v19 = vrot.slane %v1182_v17, 4  ;;  %v948_v17 = vrot.slane %v934_v8, %v3075_v52 }
0x115b   :  { %v2370_v20 = vpop.f32.mrf.mxu1 }
0x115c   :  { %v1189_v21 = vadd.f32 %v1187_v19, %v2951_v15  ;;  %v956_v19 = vrot.slane %v948_v17, %v3086_v60 }
0x115e   :  { %2503 = vtanh.f32 %v1189_v21  ;;  %v2195_v23 = vmul.f32 -1.442695, %v1189_v21 }
0x1160   :  { %2505 = vpow2.f32 %v2195_v23 }
0x116b   :  { %v2504_v22 = vpop.eup %2503 }
0x116c   :  { %1202 = vrot.lane.b32.xlu1 %v2504_v22, %s2776_s19 }
0x116d   :  { %v2506_v24 = vpop.eup %2505 }
0x116e   :  { %v1193_v25 = vadd.f32 1.0, %v2506_v24 }
0x1170   :  { %2507 = vrcp.f32 %v1193_v25 }
0x117d   :  { %v2508_v26 = vpop.eup %2507 }
0x117e   :  { %v1200_v30 = vmul.f32 %v2508_v26, %v1198_v29 }
0x11de   :  { %v1203_v27 = vpop.permute.xlu1 %1202 }
0x11df   :  { %v1205_v28 = vmul.f32 %v2508_v26, %v1203_v27  ;;  %v495_v27 = vrot.slane %v2982_v53, %v3075_v52 }
0x11e1   :  { %1207 = vrot.lane.b32.xlu0 %v1205_v28, %s2777_s7  ;;  %v782_v28 = vcombine.high %v3020_v36, %v3020_v36  ;;  %v496_v36 = vcombine.high %v495_v27, %v495_v27 }
0x1253   :  { %v1208_v31 = vpop.permute.xlu0 %1207 }
0x1254   :  { %v3065_v32 = vadd.f32 %v1208_v31, %v1200_v30  ;;  %v503_v30 = vrot.slane %v495_v27, %v3075_v52  ;;  %v789_v31 = vrot.slane %v782_v28, %v3075_v52 }
0x1256   :  { %2509 = vtanh.f32 %v3065_v32  ;;  %v1344_v22 = vrot.slane %v3065_v32, 6 }
0x1263   :  { %v2510_v33 = vpop.eup %2509 }
0x1264   :  { %1213 = vrot.lane.b32.xlu1 %v2510_v33, %s2776_s19  ;;  %v511_v33 = vcombine.high %v503_v30, %v503_v30 }
0x12d6   :  { %v1214_v18 = vpop.permute.xlu1 %1213 }
0x12d7   :  { %v1216_v35 = vmul.f32 %v2508_v26, %v1214_v18  ;;  %v1077_v18 = vrot.slane %v3057_v12, %v3075_v52  ;;  %v790_v12 = vcombine.high %v789_v31, %v789_v31 }
0x12d9   :  { %v1257_v37 = vrot.slane %v1216_v35, 4  ;;  %v1218_v34 = vcombine.high %v1216_v35, %v1216_v35  ;;  %v797_v35 = vrot.slane %v789_v31, %v3075_v52  ;;  %v804_v49 = vrot.slane %v790_v12, %v3075_v52 }
0x12db   :  { %1258 = vrot.lane.b32.xlu0 %v1257_v37, %s2777_s7  ;;  %v1225_v63 = vrot.slane %v1218_v34, %v3075_v52  ;;  %v806_v54 = vcombine.high %v804_v49, %v804_v49  ;;  %v1866_v49 = vld [vmem:[#allocation14 + $0x18] sm:$0xff] }
0x12dd   :  { %v1233_v56 = vrot.slane %v1225_v63, %v3075_v52  ;;  %v1226_v13 = vcombine.high %v1225_v63, %v1225_v63  ;;  %v814_v58 = vrot.slane %v806_v54, %v3086_v60  ;;  %v1419_v63 = vld [vmem:[#allocation11 + $0x10] sm:$0xff] }
0x12df   :  { %v1244_v5 = vrot.slane %v1233_v56, %v3086_v60  ;;  %v1240_v20 = vrot.slane %v1226_v13, %v3075_v52  ;;  %v1502_v13 = vld [vmem:[#allocation6] sm:$0xff] }
0x12e1   :  { %v1248_v21 = vrot.slane %v1240_v20, %v3086_v60 }
0x134d   :  { %v1259_v38 = vpop.permute.xlu0 %1258 }
0x134e   :  { %2380 = vmatmul.mubr.msk.f32.vlgmr.msra.gmra.mxu0 %vm3280_vm1, %v1259_v38  ;;  %v1085_v38 = vrot.slane %v1077_v18, %v3075_v52 }
0x134f   :  { %2395 = vmatprep.mubr.msk.f32.mxu0 %vm2775_vm0, %v2774_v0  ;;  %2394 = vmatpush3.xpose.msk.msra.mxu0 %vm3280_vm1, %v1502_v13 }
0x1350   :  { %2403 = vmatprep.subr.mxu0 %v2774_v0 }
0x140e   :  { %v1328_v39 = vpop.f32.mrf.mxu0 }
0x140f   :  { %v1333_v40 = vrot.slane %v1328_v39, 2  ;;  %v516_v39 = vrot.slane %v511_v33, %v3086_v60 }
0x1410   :  { %v2381_v41 = vpop.f32.mrf.mxu0 }
0x1411   :  { %v1335_v42 = vadd.f32 %v1333_v40, %v2951_v15  ;;  %v636_v15 = vcombine.high %v3001_v14, %v3001_v14  ;;  %v805_v40 = vcombine.high %v797_v35, %v797_v35 }
0x1413   :  { %2511 = vtanh.f32 %v1335_v42  ;;  %v2197_v44 = vmul.f32 -1.442695, %v1335_v42  ;;  %v643_v59 = vrot.slane %v636_v15, %v3075_v52  ;;  %v1093_v42 = vcombine.high %v1085_v38, %v1085_v38 }
0x1415   :  { %2513 = vpow2.f32 %v2197_v44  ;;  %v651_v14 = vrot.slane %v643_v59, %v3075_v52  ;;  %v644_v9 = vcombine.high %v643_v59, %v643_v59  ;;  %v510_v44 = vrot.slane %v496_v36, %v3075_v52 }
0x1416   :  { %v1098_v47 = vrot.slane %v1093_v42, %v3086_v60 }
0x1417   :  { %v662_v7 = vrot.slane %v651_v14, %v3086_v60  ;;  %v658_v11 = vrot.slane %v644_v9, %v3075_v52  ;;  %v512_v48 = vcombine.high %v510_v44, %v510_v44  ;;  %v1420_v14 = vld [vmem:[#allocation11 + $0x18] sm:$0xff]  ;;  %v1417_v9 = vld [vmem:[#allocation11] sm:$0xff] }
0x1418   :  { %2382 = vmatprep.subr.mxu1 %v1420_v14 }
0x1419   :  { %v666_v16 = vrot.slane %v658_v11, %v3086_v60  ;;  %v520_v51 = vrot.slane %v512_v48, %v3086_v60  ;;  %2383 = vmatpush3.msra.mxu1 %v1420_v14 }
0x141a   :  { %2384 = vmatprep.subr.mxu1 %v1419_v63 }
0x141b   :  { %2385 = vmatpush3.msra.mxu1 %v1419_v63 }
0x141c   :  { %2386 = vmatprep.subr.mxu1 %v1418_v1 }
0x141d   :  { %2387 = vmatpush3.msra.mxu1 %v1418_v1 }
0x141e   :  { %2388 = vmatprep.subr.mxu1 %v1417_v9 }
0x141f   :  { %2389 = vmatpush3.msra.mxu1 %v1417_v9  ;;  %v1860_v9 = vld [vmem:[#allocation12 + $0x8] sm:$0xff] }
0x1420   :  { %v2512_v43 = vpop.eup %2511  ;;  %2398 = vmatprep.subr.mxu1 %v2774_v0 }
0x1421   :  { %1348 = vrot.lane.b32.xlu1 %v2512_v43, %s2776_s19  ;;  %v810_v43 = vrot.slane %v805_v40, %v3086_v60 }
0x1422   :  { %v2514_v45 = vpop.eup %2513 }
0x1423   :  { %v1339_v46 = vadd.f32 1.0, %v2514_v45 }
0x1425   :  { %2515 = vrcp.f32 %v1339_v46  ;;  %v1078_v46 = vcombine.high %v1077_v18, %v1077_v18 }
0x1427   :  { %v1092_v15 = vrot.slane %v1078_v46, %v3075_v52 }
0x1429   :  { %v1094_v59 = vcombine.high %v1092_v15, %v1092_v15 }
0x1432   :  { %v3081_v55 = vpop.eup %2515 }
0x1433   :  { %v1346_v23 = vmul.f32 %v3081_v55, %v1344_v22 }
0x1493   :  { %v1349_v57 = vpop.permute.xlu1 %1348 }
0x1494   :  { %v1351_v3 = vmul.f32 %v3081_v55, %v1349_v57 }
0x1496   :  { %1353 = vrot.lane.b32.xlu0 %v1351_v3, %s2777_s7  ;;  %v1102_v3 = vrot.slane %v1094_v59, %v3086_v60  ;;  %v1865_v59 = vld [vmem:[#allocation14 + $0x10] sm:$0xff] }
0x149a   :  { %374 = vrot.lane.b32.xlu0 %v369_v4, %s2777_s7 }
0x149e   :  { %667 = vrot.lane.b32.xlu0 %v662_v7, %s2777_s7 }
0x14a2   :  { %957 = vrot.lane.b32.xlu0 %v952_v2, %s2777_s7 }
0x14a6   :  { %1249 = vrot.lane.b32.xlu0 %v1244_v5, %s2777_s7 }
0x14aa   :  { %376 = vrot.lane.b32.xlu0 %v373_v10, %s2777_s7 }
0x14ae   :  { %669 = vrot.lane.b32.xlu0 %v666_v16, %s2777_s7 }
0x14b2   :  { %959 = vrot.lane.b32.xlu0 %v956_v19, %s2777_s7 }
0x14b6   :  { %1251 = vrot.lane.b32.xlu0 %v1248_v21, %s2777_s7 }
0x1508   :  { %v1354_v24 = vpop.permute.xlu0 %1353 }
0x1509   :  { %v3117_v25 = vadd.f32 %v1354_v24, %v1346_v23  ;;  %v1503_v24 = vld [vmem:[#allocation6 + $0x8] sm:$0xff] }
0x150b   :  { %2517 = vtanh.f32 %v3117_v25 }
0x150c   :  { %v375_v26 = vpop.permute.xlu0 %374 }
0x150d   :  { %381 = vst.msk [vmem:[#allocation2] sm:$0x1] %vm3279_vm2, %v375_v26 }
0x1510   :  { %v668_v29 = vpop.permute.xlu0 %667 }
0x1511   :  { %673 = vst.msk [vmem:[#allocation2 + $0x2] sm:$0x1] %vm3279_vm2, %v668_v29  ;;  %v2200_v29 = vld.sshfl [vmem:[%s3265_s2] sm:$0x11 pattern:$0x75316420] }
0x1512   :  { %v1513_v30 = vcombine.high %v2200_v29, %v2200_v29  ;;  %s2779_s2 = smov 96  }
0x1514   :  { %v958_v32 = vpop.permute.xlu0 %957  ;;  %v1527_v31 = vrot.slane %v1513_v30, %v3075_v52 }
0x1515   :  { %963 = vst.msk [vmem:[#allocation2 + $0x4] sm:$0x1] %vm3279_vm2, %v958_v32  ;;  %v1520_v32 = vrot.slane %v2200_v29, %v3075_v52 }
0x1516   :  { %v1535_v33 = vrot.slane %v1527_v31, %v3086_v60 }
0x1517   :  { %v1531_v18 = vrot.slane %v1520_v32, %v3086_v60 }
0x1518   :  { %v2518_v53 = vpop.eup %2517  ;;  %v1250_v37 = vpop.permute.xlu0 %1249 }
0x1519   :  { %1255 = vst.msk [vmem:[#allocation2 + $0x6] sm:$0x1] %vm3279_vm2, %v1250_v37  ;;  %1359 = vrot.lane.b32.xlu1 %v2518_v53, %s2776_s19 }
0x151c   :  { %v377_v41 = vpop.permute.xlu0 %376 }
0x151d   :  { %382 = vst.msk [vmem:[#allocation2 + $0x8] sm:$0x1] %vm3279_vm2, %v377_v41  ;;  %521 = vrot.lane.b32.xlu1 %v516_v39, %s2777_s7 }
0x1520   :  { %v670_v45 = vpop.permute.xlu0 %669 }
0x1521   :  { %674 = vst.msk [vmem:[#allocation2 + $0xa] sm:$0x1] %vm3279_vm2, %v670_v45  ;;  %815 = vrot.lane.b32.xlu1 %v810_v43, %s2777_s7 }
0x1524   :  { %v960_v50 = vpop.permute.xlu0 %959 }
0x1525   :  { %964 = vst.msk [vmem:[#allocation2 + $0xc] sm:$0x1] %vm3279_vm2, %v960_v50  ;;  %1103 = vrot.lane.b32.xlu1 %v1098_v47, %s2777_s7  ;;  %v1862_v50 = vld [vmem:[#allocation12 + $0x18] sm:$0xff] }
0x1528   :  { %v1252_v57 = vpop.permute.xlu0 %1251 }
0x1529   :  { %1256 = vst.msk [vmem:[#allocation2 + $0xe] sm:$0x1] %vm3279_vm2, %v1252_v57  ;;  %523 = vrot.lane.b32.xlu1 %v520_v51, %s2777_s7 }
0x152d   :  { %817 = vrot.lane.b32.xlu1 %v814_v58, %s2777_s7 }
0x1531   :  { %1105 = vrot.lane.b32.xlu1 %v1102_v3, %s2777_s7 }
0x158b   :  { %v1360_v61 = vpop.permute.xlu1 %1359 }
0x158c   :  { %v3155_v34 = vmul.f32 %v3081_v55, %v1360_v61 }
0x158e   :  { %v1364_v4 = vcombine.high %v3155_v34, %v3155_v34 }
0x158f   :  { %v522_v62 = vpop.permute.xlu1 %521 }
0x1590   :  { %v1371_v7 = vrot.slane %v1364_v4, %v3075_v52  ;;  %527 = vst.msk [vmem:[#allocation2 + $0x1] sm:$0x1] %vm3279_vm2, %v522_v62  ;;  %v1861_v4 = vld [vmem:[#allocation12 + $0x10] sm:$0xff] }
0x1592   :  { %v1372_v2 = vcombine.high %v1371_v7, %v1371_v7  ;;  %v1379_v56 = vrot.slane %v1371_v7, %v3075_v52 }
0x1593   :  { %v816_v55 = vpop.permute.xlu1 %815 }
0x1594   :  { %821 = vst.msk [vmem:[#allocation2 + $0x3] sm:$0x1] %vm3279_vm2, %v816_v55  ;;  %v1387_v5 = vcombine.high %v1379_v56, %v1379_v56  ;;  %v1386_v6 = vrot.slane %v1372_v2, %v3075_v52 }
0x1596   :  { %v1392_v8 = vrot.slane %v1387_v5, %v3086_v60  ;;  %v1388_v10 = vcombine.high %v1386_v6, %v1386_v6  ;;  %v1859_v5 = vld [vmem:[#allocation12] sm:$0xff] }
0x1597   :  { %v1104_v11 = vpop.permute.xlu1 %1103 }
0x1598   :  { %1109 = vst.msk [vmem:[#allocation2 + $0x5] sm:$0x1] %vm3279_vm2, %v1104_v11  ;;  %1397 = vrot.lane.b32.xlu1 %v1392_v8, %s2777_s7  ;;  %v1396_v16 = vrot.slane %v1388_v10, %v3086_v60 }
0x159b   :  { %v524_v17 = vpop.permute.xlu1 %523 }
0x159c   :  { %528 = vst.msk [vmem:[#allocation2 + $0x9] sm:$0x1] %vm3279_vm2, %v524_v17  ;;  %1399 = vrot.lane.b32.xlu1 %v1396_v16, %s2777_s7 }
0x159f   :  { %v818_v19 = vpop.permute.xlu1 %817 }
0x15a0   :  { %822 = vst.msk [vmem:[#allocation2 + $0xb] sm:$0x1] %vm3279_vm2, %v818_v19 }
0x15a3   :  { %v1106_v20 = vpop.permute.xlu1 %1105 }
0x15a4   :  { %1110 = vst.msk [vmem:[#allocation2 + $0xd] sm:$0x1] %vm3279_vm2, %v1106_v20 }
0x160a   :  { %v1398_v21 = vpop.permute.xlu1 %1397 }
0x160b   :  { %1403 = vst.msk [vmem:[#allocation2 + $0x7] sm:$0x1] %vm3279_vm2, %v1398_v21 }
0x160e   :  { %v1400_v22 = vpop.permute.xlu1 %1399 }
0x160f   :  { %1404 = vst.msk [vmem:[#allocation2 + $0xf] sm:$0x1] %vm3279_vm2, %v1400_v22  ;;  %vm2093_vm2 = vcmask 1047559  }
0x1612   :  { %v3177_v23 = vld [vmem:[#allocation2] sm:$0xff] }
0x1613   :  { %2390 = vmatprep.mubr.msk.f32.mxu1 %vm3280_vm1, %v3177_v23 }
0x1616   :  { %v3181_v26 = vld [vmem:[#allocation2 + $0x8] sm:$0xff] }
0x1617   :  { %2391 = vmatmul.mubr.msk.f32.vlgmr.msra.gmra.mxu1 %vm3280_vm1, %v3181_v26 }
0x1618   :  { %2399 = vmatpush3.xpose.msk.msra.mxu1 %vm3280_vm1, %v1503_v24  ;;  %2400 = vmatprep.mubr.msk.f32.mxu1 %vm2775_vm0, %v2774_v0 }
0x1619   :  { %2408 = vmatprep.subr.mxu1 %v2774_v0 }
0x16d7   :  { %v2392_v27 = vpop.f32.mrf.mxu1 }
0x16d8   :  { %2401 = vmatmul.mubr.msk.f32.vlgmr.msra.gmra.mxu1 %vm3280_vm1, %v2392_v27 }
0x16d9   :  { %v1493_v28 = vpop.f32.mrf.mxu1  ;;  %2409 = vmatpush3.msra.mxu1 %v1503_v24  ;;  %2410 = vmatprep.mubr.msk.f32.mxu1 %vm2775_vm0, %v2774_v0 }
0x16da   :  { %2396 = vmatmul.mubr.msk.f32.vlgmr.msra.gmra.mxu0 %vm3280_vm1, %v1493_v28  ;;  %2424 = vmatprep.subr.mxu1 %v1862_v50 }
0x16db   :  { %2404 = vmatpush3.msra.mxu0 %v1502_v13  ;;  %2405 = vmatprep.mubr.msk.f32.mxu0 %vm2775_vm0, %v2774_v0  ;;  %vm2069_vm0 = vcmask 61443  }
0x16dc   :  { %2413 = vmatprep.subr.mxu0 %v1866_v49 }
0x1798   :  { %v1686_v35 = vpop.f32.mrf.mxu1 }
0x1799   :  { %v1687_v53 = vadd.f32 %v1686_v35, %v1535_v33 }
0x179a   :  { %v1610_v37 = vpop.f32.mrf.mxu0  ;;  %v2402_v36 = vpop.f32.mrf.mxu1 }
0x179b   :  { %v1611_v38 = vadd.f32 %v1610_v37, %v1531_v18  ;;  %v1694_v0 = vsel %vm1690_vm3, %v1687_v53, -inf }
0x179c   :  { %1695 = vmax.xlane.f32.xlu1 %v1694_v0  ;;  %v2397_v39 = vpop.f32.mrf.mxu0 }
0x179d   :  { %v1691_v40 = vsel %vm1690_vm3, %v1611_v38, -inf }
0x179e   :  { %1692 = vmax.xlane.f32.xlu0 %v1691_v40 }
0x17ad   :  { %1405 = vrot.lane.b32.xlu1 %v3155_v34, %s2777_s7  ;;  %v1863_v34 = vld [vmem:[#allocation14] sm:$0xff] }
0x1825   :  { %v1696_v52 = vpop.xlane.xlu1 %1695 }
0x1826   :  { %v1698_v41 = vsub.f32 %v1687_v53, %v1696_v52 }
0x1827   :  { %v1693_v12 = vpop.xlane.xlu0 %1692 }
0x1828   :  { %v1697_v60 = vsub.f32 %v1611_v38, %v1693_v12  ;;  %v1701_v43 = vmul.f32 1.442695, %v1698_v41 }
0x1829   :  { %v1406_v42 = vpop.permute.xlu1 %1405 }
0x182a   :  { %v1699_v44 = vmul.f32 1.442695, %v1697_v60  ;;  %1409 = vst.msk [vmem:[#allocation18 - $0x6] sm:$0xc0] %vm3278_vm4, %v1406_v42 }
0x182c   :  { %2519 = vpow2.f32 %v1699_v44 }
0x182d   :  { %2521 = vpow2.f32 %v1701_v43 }
0x1839   :  { %v2520_v45 = vpop.eup %2519 }
0x183a   :  { %v1703_v46 = vsel %vm1690_vm3, %v2520_v45, 0.0  ;;  %v2522_v47 = vpop.eup %2521 }
0x183b   :  { %1704 = vadd.xlane.f32.xlu0 %v1703_v46  ;;  %v1706_v48 = vsel %vm1690_vm3, %v2522_v47, 0.0 }
0x183f   :  { %1707 = vadd.xlane.f32.xlu0 %v1706_v48 }
0x1855   :  { %1411 = vrot.lane.b32.xlu0 %v3117_v25, %s2779_s2  ;;  %v1864_v25 = vld [vmem:[#allocation14 + $0x8] sm:$0xff] }
0x18c4   :  { %v1705_v51 = vpop.xlane.xlu0 %1704 }
0x18c5   :  { %2523 = vrcp.f32 %v1705_v51 }
0x18c8   :  { %v1708_v54 = vpop.xlane.xlu0 %1707 }
0x18c9   :  { %2525 = vrcp.f32 %v1708_v54 }
0x18cc   :  { %v1412_v15 = vpop.permute.xlu0 %1411 }
0x18cd   :  { %1414 = vst.msk [vmem:[#allocation19 - $0x6] sm:$0xc0] %vm3278_vm4, %v1412_v15  ;;  %vm2091_vm4 = vcmask 63493  }
0x18d2   :  { %v2524_v57 = vpop.eup %2523 }
0x18d3   :  { %v1710_v58 = vmul.f32 %v2524_v57, %v2520_v45 }
0x18d5   :  { %2406 = vmatmul.mubr.msk.f32.vlgmr.msra.gmra.mxu0 %vm1690_vm3, %v1710_v58  ;;  %2113 = vst.msk [vmem:[#allocation16 + $0x7] sm:$0x80] %vm2112_vm5, %v1710_v58  ;;  %vm2080_vm5 = vcmask 62468  }
0x18d6   :  { %v2526_v3 = vpop.eup %2525  ;;  %2414 = vmatpush3.msra.mxu0 %v1866_v49  ;;  %2421 = vmatprep.mubr.msk.f32.mxu0 %vm3280_vm1, %v3177_v23  ;;  %vm2101_vm1 = vcmask 64518  }
0x18d7   :  { %2415 = vmatprep.subr.mxu0 %v1865_v59  ;;  %v1712_v61 = vmul.f32 %v2526_v3, %v2522_v47 }
0x18d8   :  { %2416 = vmatpush3.msra.mxu0 %v1865_v59 }
0x18d9   :  { %2417 = vmatprep.subr.mxu0 %v1864_v25  ;;  %2411 = vmatmul.mubr.msk.f32.vlgmr.msra.gmra.mxu1 %vm1690_vm3, %v1712_v61  ;;  %v2033_v14 = vrot.slane %v1712_v61, 7  ;;  %vm3281_vm3 = vcmask 261120  }
0x18da   :  { %2418 = vmatpush3.msra.mxu0 %v1864_v25  ;;  %2425 = vmatpush3.msra.mxu1 %v1862_v50 }
0x18db   :  { %2419 = vmatprep.subr.mxu0 %v1863_v34  ;;  %2426 = vmatprep.subr.mxu1 %v1861_v4  ;;  %v2034_v62 = vsel %vm2028_vm6, %v2033_v14, %v1710_v58  ;;  %v2044_v63 = vsel %vm2038_vm7, %v2033_v14, %v1710_v58  ;;  %v2055_v7 = vsel %vm2049_vm8, %v2033_v14, %v1710_v58 }
0x18dc   :  { %2115 = vst.msk [vmem:[#allocation16 + $0xf] sm:$0x1] %vm2114_vm12, %v2033_v14  ;;  %2420 = vmatpush3.msra.mxu0 %v1863_v34  ;;  %2427 = vmatpush3.msra.mxu1 %v1861_v4  ;;  %v2066_v1 = vsel %vm2060_vm11, %v2033_v14, %v1710_v58  ;;  %v2077_v2 = vsel %vm2071_vm14, %v2033_v14, %v1710_v58 }
0x18dd   :  { %2037 = vst.msk [vmem:[#allocation16] sm:$0x3] %vm2036_vm9, %v2034_v62  ;;  %v2088_v56 = vsel %vm2082_vm15, %v2033_v14, %v1710_v58  ;;  %2422 = vmatmul.mubr.msk.f32.vlgmr.msra.gmra.mxu0 %vm3281_vm3, %v3181_v26  ;;  %v2098_v55 = vsel %vm2093_vm2, %v2033_v14, %v1710_v58  ;;  %2428 = vmatprep.subr.mxu1 %v1860_v9  ;;  %vm3282_vm9 = vmmov %vm3281_vm3 }
0x18de   :  { %2048 = vst.msk [vmem:[#allocation16 + $0x1] sm:$0x6] %vm2047_vm10, %v2044_v63  ;;  %2429 = vmatpush3.msra.mxu1 %v1860_v9  ;;  %vm3283_vm10 = vmmov %vm3281_vm3 }
0x18df   :  { %2059 = vst.msk [vmem:[#allocation16 + $0x2] sm:$0xc] %vm2058_vm13, %v2055_v7  ;;  %2430 = vmatprep.subr.mxu1 %v1859_v5 }
0x18e0   :  { %2070 = vst.msk [vmem:[#allocation16 + $0x3] sm:$0x18] %vm2069_vm0, %v2066_v1  ;;  %2431 = vmatpush3.msra.mxu1 %v1859_v5 }
0x18e1   :  { %2081 = vst.msk [vmem:[#allocation16 + $0x4] sm:$0x30] %vm2080_vm5, %v2077_v2 }
0x18e2   :  { %2092 = vst.msk [vmem:[#allocation16 + $0x5] sm:$0x60] %vm2091_vm4, %v2088_v56 }
0x18e3   :  { %2102 = vst.msk [vmem:[#allocation16 + $0x6] sm:$0xc0] %vm2101_vm1, %v2098_v55 }
0x1995   :  { %v1782_v6 = vpop.f32.mrf.mxu0 }
0x1996   :  { %2432 = vmatprep.mubr.msk.f32.mxu1 %vm3282_vm9, %v1782_v6 }
0x1997   :  { %v2407_v8 = vpop.f32.mrf.mxu0 }
0x1999   :  { %v1855_v10 = vpop.f32.mrf.mxu1 }
0x199a   :  { %2433 = vmatmul.mubr.msk.f32.vlgmr.msra.gmra.mxu1 %vm3283_vm10, %v1855_v10 }
0x199b   :  { %v2412_v11 = vpop.f32.mrf.mxu1 }
0x199c   :  { %2682 = shalt.err (!%p2679_p11)
}
0x199d   :  { %s2781_s21 = smov 2   ;;  %s2782_s23 = smov [#allocation18]  }
0x199e   :  { %2139 = dma.vmem_to_hbm [thread:$0]  %s2134_s17, 256, %s3275_s12, [#allocation17], %s2777_s7, %s2777_s7, %s2781_s21  }
0x199f   :  { %s2146_s24 = sshll.u32 %s2782_s23, 4  ;;  %s2783_s0 = smov [#allocation19]   ;;  %s2147_s24 = int_to_ptr.vmem [resolvable:$true] %s2146_s24 }
0x19a0   :  { %s2156_s25 = sshll.u32 %s2783_s0, 4  ;;  %s2691_s26 = scalar_lea.vmem %s2147_s24, 32  ;;  %s2157_s25 = int_to_ptr.vmem [resolvable:$true] %s2156_s25 }
0x19a1   :  { %p2692_p12 = scmp.ne.s32.totalorder %s2147_s24, %s2691_s26  ;;  %p2696_p13 = scmp.lt.s32.totalorder %s2147_s24, %s2147_s24 }
0x19a2   :  { %p2697_p0 = scmp.lt.s32.totalorder %s2691_s26, %s2691_s26 }
0x19a4   :  { %p2698_p1 = por %p2697_p0, %p2696_p13 }
0x19a6   :  { %p2699_p2 = pnand %p2698_p1, %p2692_p12 }
0x19a8   :  { %2702 = shalt.err (!%p2699_p2)
}
0x19a9   :  { %2149 = dma.vmem_to_hbm [thread:$0]  %s2147_s24, 32, %s3276_s13, [#allocation17]  }
0x19aa   :  { %s2711_s1 = scalar_lea.vmem %s2157_s25, 32  ;;  %p2716_p4 = scmp.lt.s32.totalorder %s2157_s25, %s2157_s25 }
0x19ab   :  { %p2712_p3 = scmp.ne.s32.totalorder %s2157_s25, %s2711_s1  ;;  %p2717_p5 = scmp.lt.s32.totalorder %s2711_s1, %s2711_s1 }
0x19ad   :  { %p2718_p6 = por %p2717_p5, %p2716_p4 }
0x19af   :  { %p2719_p7 = pnand %p2718_p6, %p2712_p3 }
0x19b1   :  { %2722 = shalt.err (!%p2719_p7)
}
0x19b2   :  { %2159 = dma.vmem_to_hbm [thread:$0]  %s2157_s25, 32, %s3277_s14, [#allocation20]   ;;  %v2423_v13 = vpop.f32.mrf.mxu0  ;;  %vm2031_vm1 = vcmask 254976   ;;  %vm2106_vm4 = vcmask 261127   ;;  %vm2042_vm12 = vcmask 256001   ;;  %vm2053_vm13 = vcmask 257026  }
0x19b3   :  { %s2784_s13 = smov [#allocation15]   ;;  %vm2064_vm0 = vcmask 258051   ;;  %vm2075_vm5 = vcmask 259076   ;;  %vm2086_vm3 = vcmask 260101   ;;  %vm3284_vm9 = vcmask 253952  }
0x19b4   :  { %v1933_v19 = vpop.f32.mrf.mxu0  ;;  %s2121_s29 = sshll.u32 %s2784_s13, 4  ;;  %s2122_s29 = int_to_ptr.vmem [resolvable:$true] %s2121_s29 }
0x19b5   :  { %s2731_s14 = scalar_lea.vmem %s2122_s29, 256  ;;  %p2736_p9 = scmp.lt.s32.totalorder %s2122_s29, %s2122_s29 }
0x19b6   :  { %p2732_p8 = scmp.ne.s32.totalorder %s2122_s29, %s2731_s14  ;;  %p2737_p10 = scmp.lt.s32.totalorder %s2731_s14, %s2731_s14 }
0x19b8   :  { %p2738_p11 = por %p2737_p10, %p2736_p9 }
0x19ba   :  { %p2739_p12 = pnand %p2738_p11, %p2732_p8 }
0x1a5a   :  { %v2434_v16 = vpop.f32.mrf.mxu1 }
0x1a5b   :  { %v2020_v17 = vadd.f32 %v2434_v16, %v2423_v13 }
0x1a5c   :  { %v2014_v20 = vpop.f32.mrf.mxu1 }
0x1a5d   :  { %2527 = vtanh.f32 %v2020_v17  ;;  %v2015_v21 = vadd.f32 %v2014_v20, %v1933_v19 }
0x1a5f   :  { %2529 = vtanh.f32 %v2015_v21 }
0x1a6a   :  { %v2528_v22 = vpop.eup %2527 }
0x1a6b   :  { %v2027_v23 = vrot.slane %v2528_v22, 7 }
0x1a6c   :  { %v2530_v24 = vpop.eup %2529 }
0x1a6d   :  { %2108 = vst.msk [vmem:[#allocation15 + $0xf] sm:$0x1] %vm3284_vm9, %v2027_v23  ;;  %v2029_v26 = vsel %vm2028_vm6, %v2027_v23, %v2530_v24  ;;  %v2039_v27 = vsel %vm2038_vm7, %v2027_v23, %v2530_v24  ;;  %v2050_v28 = vsel %vm2049_vm8, %v2027_v23, %v2530_v24  ;;  %v2061_v29 = vsel %vm2060_vm11, %v2027_v23, %v2530_v24 }
0x1a6e   :  { %2107 = vst.msk [vmem:[#allocation15 + $0x7] sm:$0x80] %vm2106_vm4, %v2530_v24  ;;  %v2072_v30 = vsel %vm2071_vm14, %v2027_v23, %v2530_v24  ;;  %v2083_v31 = vsel %vm2082_vm15, %v2027_v23, %v2530_v24  ;;  %v2094_v32 = vsel %vm2093_vm2, %v2027_v23, %v2530_v24  ;;  %vm3285_vm6 = vcmask 261126  }
0x1a6f   :  { %2032 = vst.msk [vmem:[#allocation15] sm:$0x3] %vm2031_vm1, %v2029_v26 }
0x1a70   :  { %2043 = vst.msk [vmem:[#allocation15 + $0x1] sm:$0x6] %vm2042_vm12, %v2039_v27 }
0x1a71   :  { %2054 = vst.msk [vmem:[#allocation15 + $0x2] sm:$0xc] %vm2053_vm13, %v2050_v28 }
0x1a72   :  { %2065 = vst.msk [vmem:[#allocation15 + $0x3] sm:$0x18] %vm2064_vm0, %v2061_v29 }
0x1a73   :  { %2076 = vst.msk [vmem:[#allocation15 + $0x4] sm:$0x30] %vm2075_vm5, %v2072_v30 }
0x1a74   :  { %2087 = vst.msk [vmem:[#allocation15 + $0x5] sm:$0x60] %vm2086_vm3, %v2083_v31 }
0x1a75   :  { %2097 = vst.msk [vmem:[#allocation15 + $0x6] sm:$0xc0] %vm3285_vm6, %v2094_v32 }
0x1a76   :  { %2742 = shalt.err (!%p2739_p12)
}
0x1a77   :  { %2127 = dma.vmem_to_hbm [thread:$0]  %s2122_s29, 256, %s3274_s11, [#allocation5], %s2777_s7, %s2777_s7, %s2781_s21  }
0x1a78   :  { %2759 = dma.done.wait [#allocation5], 256  }
0x1a79   :  { %2760 = vsyncadd [#allocation5], 4294967040 }
0x1a7a   :  { %2761 = dma.done.wait [#allocation17], 288  }
0x1a7b   :  { %2762 = vsyncadd [#allocation17], 4294967008 }
0x1a7c   :  { %2763 = dma.done.wait [#allocation20], 32  }
0x1a7d   :  { %2764 = vsyncadd [#allocation20], 4294967264 }
0x1a7e   :  { %2172 = vsyncpa [#allocation4], 1 }
0x1a7f   :  { %2173 = vsyncpa [#allocation7], 1 }
0x1a80   :  { %2174 = vsyncpa [#allocation10], 1 }
0x1a81   :  { %2175 = vsyncpa [#allocation13], 1 }
0x1a82   :  { %2176 = vsyncpa [#allocation5], 1 }
0x1a83   :  { %2177 = vsyncpa [#allocation17], 1 }
0x1a84   :  { %2178 = vsyncpa [#allocation20], 1 }

</bundles_post_ra>
